<compile_context>
chip_gen: v7x
topology: tpu7x:2x2x1
jax: 0.10.0
libtpu: 0.0.40
codegen_flags: <defaults>
</compile_context>

<pallas_src>
import functools

import jax
import jax.numpy as jnp
from jax import lax
from jax.experimental import pallas as pl
from jax.experimental.pallas import tpu as pltpu
import numpy as np


def ce_lse_kernel(h_ref, w_ref, tgt_ref, out_ref, m_ref, l_ref,
                  *, tv, v_actual, v_padded):
    """One (token-tile i, vocab-tile k) grid step.

    h_ref  : (H, tm)  bf16   hidden states, tokens on lanes (resident across k)
    w_ref  : (tv, H)  bf16   vocab-projection rows for this vocab tile (streamed)
    tgt_ref: (1, tm)  int32  target ids (-1 => masked / padded token)
    out_ref: (1, tm)  f32    accumulates picked-target logit; finalized to the
                             masked per-token CE on the last vocab tile
    m/l    : (1, tm)  f32    running max / running sum(exp) scratch
    """
    k = pl.program_id(1)
    nk = pl.num_programs(1)

    @pl.when(k == 0)
    def _init():
        m_ref[...] = jnp.full(m_ref.shape, -jnp.inf, dtype=jnp.float32)
        l_ref[...] = jnp.zeros(l_ref.shape, dtype=jnp.float32)
        out_ref[...] = jnp.zeros(out_ref.shape, dtype=jnp.float32)

    # (tv, H) @ (H, tm) -> (tv, tm) logits on the MXU: bf16 inputs, f32 accum.
    logits = jnp.dot(w_ref[...], h_ref[...], preferred_element_type=jnp.float32)

    # global vocab row index of each logit row in this tile
    row = k * tv + lax.broadcasted_iota(jnp.int32, logits.shape, 0)
    if v_padded:
        # zero-padded vocab rows (only in the last tile) must not contribute to
        # the softmax denominator; -1e30 (not -inf) keeps exp/max NaN-free.
        logits = jnp.where(row < v_actual, logits, jnp.float32(-1e30))

    tgt = tgt_ref[...]                                        # (1, tm) int32

    # online logsumexp over the vocab axis (sublane reduction, tokens on lanes)
    m_prev = m_ref[...]
    m_new = jnp.maximum(m_prev, jnp.max(logits, axis=0, keepdims=True))
    l_ref[...] = l_ref[...] * jnp.exp(m_prev - m_new) + jnp.sum(
        jnp.exp(logits - m_new), axis=0, keepdims=True)
    m_ref[...] = m_new

    # picked logit at the target id (exactly one vocab row matches per token;
    # tgt == -1 never matches, so masked tokens accumulate 0). Accumulated in
    # the resident output block — no extra scratch needed.
    out_ref[...] += jnp.sum(jnp.where(row == tgt, logits, 0.0),
                            axis=0, keepdims=True)

    @pl.when(k == nk - 1)
    def _finalize():
        lse = m_ref[...] + jnp.log(l_ref[...])
        mask = (tgt >= 0).astype(jnp.float32)
        out_ref[...] = (lse - out_ref[...]) * mask            # lane-dense store


def per_token_masked_ce(h_t, w_vh, tgt_row, v_actual, *, tm=256, tv=256):
    """h_t: (H, BTp) bf16; w_vh: (Vp, H) bf16; tgt_row: (1, BTp) int32 -> (1, BTp) f32."""
    H, BTp = h_t.shape
    Vp = w_vh.shape[0]
    assert BTp % tm == 0 and Vp % tv == 0

    kernel = functools.partial(ce_lse_kernel, tv=tv, v_actual=v_actual,
                               v_padded=(Vp != v_actual))
    return pl.pallas_call(
        kernel,
        out_shape=jax.ShapeDtypeStruct((1, BTp), jnp.float32),
        grid_spec=pltpu.PrefetchScalarGridSpec(
            num_scalar_prefetch=0,
            grid=(BTp // tm, Vp // tv),               # vocab (reduction) axis last
            in_specs=[
                pl.BlockSpec((H, tm), lambda i, k: (0, i)),   # hidden, resident over k
                pl.BlockSpec((tv, H), lambda i, k: (k, 0)),   # vocab rows, streamed
                pl.BlockSpec((1, tm), lambda i, k: (0, i)),   # targets, lane-dense
            ],
            out_specs=pl.BlockSpec((1, tm), lambda i, k: (0, i)),
            scratch_shapes=[pltpu.VMEM((1, tm), jnp.float32),
                            pltpu.VMEM((1, tm), jnp.float32)],
        ),
        compiler_params=pltpu.CompilerParams(
            dimension_semantics=("parallel", "arbitrary")),
    )(h_t, w_vh, tgt_row)


def get_loss(x, seq_len, embed, w_out, bos_id, *, tm=256, tv=256):
    """Mirror of ModelTraining.get_loss.

    x: (B, T+1) int32 token ids (x[:, 0] == bos_id), seq_len: (B,) int32.
    The host-side BOS assert is intentionally dropped (it forces a
    device->host sync per call); it is a debug-only check.
    """
    del bos_id
    source = x[:, :-1]                              # (B, T)
    target = x[:, 1:]                               # (B, T)
    seq_len_p1 = seq_len + 1                        # matches `seq_len = seq_len + 1`
    B, T = source.shape
    H = embed.shape[1]
    V = w_out.shape[1]
    BT = B * T

    # toy model.get_logits front half: embedding lookup (bf16), tokens on lanes
    h = jnp.take(embed.astype(jnp.bfloat16), source, axis=0)    # (B, T, H) bf16
    h_t = h.reshape(BT, H).T                                     # (H, BT)

    # length_to_mask folded into the target stream: invalid positions -> -1
    pos = jnp.arange(T, dtype=jnp.int32)[None, :]
    valid = pos < seq_len_p1[:, None]
    tgt_m = jnp.where(valid, target.astype(jnp.int32), -1).reshape(1, BT)

    # pad token axis to the tile size (padded tokens carry target -1 -> loss 0)
    BTp = ((BT + tm - 1) // tm) * tm
    if BTp != BT:
        h_t = jnp.pad(h_t, ((0, 0), (0, BTp - BT)))
        tgt_m = jnp.pad(tgt_m, ((0, 0), (0, BTp - BT)), constant_values=-1)

    # vocab projection as (V, H) rows, padded to the vocab tile size
    Vp = ((V + tv - 1) // tv) * tv
    w_vh = w_out.T.astype(jnp.bfloat16)                          # (V, H)
    if Vp != V:
        w_vh = jnp.pad(w_vh, ((0, Vp - V), (0, 0)))

    loss_tok = per_token_masked_ce(h_t, w_vh, tgt_m, V, tm=tm, tv=tv)  # (1, BTp)
    loss_tok = loss_tok[0, :BT].reshape(B, T)

    loss = jnp.sum(loss_tok, axis=1) / seq_len_p1.astype(jnp.float32)  # (B,)
    return jnp.mean(loss, axis=0)                                      # scalar


def _reference_loss(x, seq_len, embed, w_out):
    """Pure-JAX reference (nn.CrossEntropyLoss(reduction='none') path).

    Uses the same bf16-rounded matmul inputs as the kernel so only accumulation
    order differs; all softmax math in f32.
    """
    source = x[:, :-1]
    target = x[:, 1:]
    seq_len_p1 = seq_len + 1
    B, T = source.shape
    h = jnp.take(embed.astype(jnp.bfloat16).astype(jnp.float32), source, axis=0)
    w = w_out.astype(jnp.bfloat16).astype(jnp.float32)
    logits = jnp.einsum("bth,hv->btv", h, w)                     # (B, T, V)
    logp = jax.nn.log_softmax(logits, axis=-1)
    ce = -jnp.take_along_axis(logp, target[..., None], axis=-1)[..., 0]  # (B, T)
    mask = (jnp.arange(T)[None, :] < seq_len_p1[:, None]).astype(jnp.float32)
    loss = jnp.sum(ce * mask, axis=1) / seq_len_p1.astype(jnp.float32)
    return jnp.mean(loss, axis=0)


if __name__ == "__main__":
    # Small deterministic setup. V is deliberately NOT a multiple of the vocab
    # tile so the padded-vocab masking and the multi-tile online LSE both run.
    B, T = 2, 8          # raw sequence x has length T+1 (BOS + T tokens)
    H, V = 128, 384
    BOS_ID = 1
    TM, TV = 256, 256

    key = jax.random.PRNGKey(0)
    k_emb, k_w, k_tok = jax.random.split(key, 3)

    embed = jax.random.normal(k_emb, (V, H), dtype=jnp.float32) * 0.02
    w_out = jax.random.normal(k_w, (H, V), dtype=jnp.float32) * 0.02

    tokens = jax.random.randint(k_tok, (B, T), 0, V, dtype=jnp.int32)
    x = jnp.concatenate([jnp.full((B, 1), BOS_ID, dtype=jnp.int32), tokens], axis=1)
    seq_len = jnp.array([5, 7], dtype=jnp.int32)

    loss = jax.block_until_ready(get_loss(x, seq_len, embed, w_out, BOS_ID,
                                          tm=TM, tv=TV))
    ref = jax.block_until_ready(_reference_loss(x, seq_len, embed, w_out))
    np.testing.assert_allclose(np.asarray(loss), np.asarray(ref),
                               rtol=1e-4, atol=1e-4)

    # TODO(synk): train_batch / Adam optimizer step (backward pass) is out of
    # scope for a forward Pallas kernel and is left to JAX autodiff + optax.
    print("KERNEL_OK")
</pallas_src>

<mosaic_0001>
module attributes {stable_mosaic.version = 11 : i64} {
  func.func @ce_lse_kernel(%arg0: i32, %arg1: i32, %arg2: memref<128x256xbf16, #tpu.memory_space<vmem>>, %arg3: memref<256x128xbf16, #tpu.memory_space<vmem>>, %arg4: memref<1x256xi32, #tpu.memory_space<vmem>>, %arg5: memref<1x256xf32, #tpu.memory_space<vmem>>, %arg6: memref<1x256xf32, #tpu.memory_space<vmem>>, %arg7: memref<1x256xf32, #tpu.memory_space<vmem>>) attributes {dimension_semantics = [#tpu.dimension_semantics<parallel>, #tpu.dimension_semantics<arbitrary>], iteration_bounds = array<i64: 1, 2>, scalar_prefetch = 0 : i64, scratch_operands = 2 : i64, tpu.core_type = #tpu.core_type<tc>, window_params = [{transform_indices = @transform_0, window_bounds = array<i64: 128, 256>}, {transform_indices = @transform_1, window_bounds = array<i64: 256, 128>}, {transform_indices = @transform_2, window_bounds = array<i64: 1, 256>}, {transform_indices = @transform_3, window_bounds = array<i64: 1, 256>}]} {
    %c0_i32 = arith.constant 0 : i32
    %0 = arith.cmpi eq, %arg1, %c0_i32 : i32
    %1 = arith.extui %0 : i1 to i32
    %c0_i32_0 = arith.constant 0 : i32
    %2 = arith.cmpi ne, %1, %c0_i32_0 : i32
    scf.if %2 {
      %cst_24 = arith.constant 0xFF800000 : f32
      %43 = vector.broadcast %cst_24 : f32 to vector<1x256xf32>
      %c0_25 = arith.constant 0 : index
      %c0_26 = arith.constant 0 : index
      %44 = vector.load %arg6[%c0_25, %c0_26] : memref<1x256xf32, #tpu.memory_space<vmem>>, vector<1x256xf32>
      tpu.vector_store %arg6[%c0_25, %c0_26], %43 {strides = array<i32>} : memref<1x256xf32, #tpu.memory_space<vmem>>, vector<1x256xf32>,
      %cst_27 = arith.constant 0.000000e+00 : f32
      %45 = vector.broadcast %cst_27 : f32 to vector<1x256xf32>
      %c0_28 = arith.constant 0 : index
      %c0_29 = arith.constant 0 : index
      %46 = vector.load %arg7[%c0_28, %c0_29] : memref<1x256xf32, #tpu.memory_space<vmem>>, vector<1x256xf32>
      tpu.vector_store %arg7[%c0_28, %c0_29], %45 {strides = array<i32>} : memref<1x256xf32, #tpu.memory_space<vmem>>, vector<1x256xf32>,
      %cst_30 = arith.constant 0.000000e+00 : f32
      %47 = vector.broadcast %cst_30 : f32 to vector<1x256xf32>
      %c0_31 = arith.constant 0 : index
      %c0_32 = arith.constant 0 : index
      %48 = vector.load %arg5[%c0_31, %c0_32] : memref<1x256xf32, #tpu.memory_space<vmem>>, vector<1x256xf32>
      tpu.vector_store %arg5[%c0_31, %c0_32], %47 {strides = array<i32>} : memref<1x256xf32, #tpu.memory_space<vmem>>, vector<1x256xf32>,
    } else {
    }
    %c0 = arith.constant 0 : index
    %c0_1 = arith.constant 0 : index
    %3 = vector.load %arg3[%c0, %c0_1] : memref<256x128xbf16, #tpu.memory_space<vmem>>, vector<256x128xbf16>
    %c0_2 = arith.constant 0 : index
    %c0_3 = arith.constant 0 : index
    %4 = vector.load %arg2[%c0_2, %c0_3] : memref<128x256xbf16, #tpu.memory_space<vmem>>, vector<128x256xbf16>
    %cst = arith.constant dense<0.000000e+00> : vector<256x256xf32>
    %5 = tpu.matmul %3, %4, %cst {dimension_numbers = #tpu.dot_dimension_numbers<[1], [0], [0], [1], [0, 0, 1, 1], [], []>} : vector<256x128xbf16>, vector<128x256xbf16>, vector<256x256xf32> -> vector<256x256xf32>
    %c256_i32 = arith.constant 256 : i32
    %6 = arith.muli %arg1, %c256_i32 : i32
    %7 = tpu.iota {dimensions = array<i32: 0>} : vector<256x256xi32>
    %8 = vector.broadcast %6 : i32 to vector<256x256xi32>
    %9 = arith.addi %8, %7 : vector<256x256xi32>
    %c384_i32 = arith.constant 384 : i32
    %10 = vector.broadcast %c384_i32 : i32 to vector<256x256xi32>
    %11 = arith.cmpi slt, %9, %10 : vector<256x256xi32>
    %cst_4 = arith.constant -1.000000e+30 : f32
    %12 = vector.broadcast %cst_4 : f32 to vector<256x256xf32>
    %13 = arith.select %11, %5, %12 : vector<256x256xi1>, vector<256x256xf32>
    %c0_5 = arith.constant 0 : index
    %c0_6 = arith.constant 0 : index
    %14 = vector.load %arg4[%c0_5, %c0_6] : memref<1x256xi32, #tpu.memory_space<vmem>>, vector<1x256xi32>
    %c0_7 = arith.constant 0 : index
    %c0_8 = arith.constant 0 : index
    %15 = vector.load %arg6[%c0_7, %c0_8] : memref<1x256xf32, #tpu.memory_space<vmem>>, vector<1x256xf32>
    %cst_9 = arith.constant dense<0xFF800000> : vector<256xf32>
    %16 = vector.multi_reduction <maximumf>, %13, %cst_9 [0] : vector<256x256xf32> to vector<256xf32>
    %17 = vector.shape_cast %16 : vector<256xf32> to vector<1x256xf32>
    %18 = arith.maximumf %15, %17 : vector<1x256xf32>
    %c0_10 = arith.constant 0 : index
    %c0_11 = arith.constant 0 : index
    %19 = vector.load %arg7[%c0_10, %c0_11] : memref<1x256xf32, #tpu.memory_space<vmem>>, vector<1x256xf32>
    %20 = arith.subf %15, %18 : vector<1x256xf32>
    %21 = math.exp %20 : vector<1x256xf32>
    %22 = arith.mulf %19, %21 : vector<1x256xf32>
    %23 = vector.broadcast %18 : vector<1x256xf32> to vector<256x256xf32>
    %24 = arith.subf %13, %23 : vector<256x256xf32>
    %25 = math.exp %24 : vector<256x256xf32>
    %cst_12 = arith.constant dense<0.000000e+00> : vector<256xf32>
    %26 = vector.multi_reduction <add>, %25, %cst_12 [0] : vector<256x256xf32> to vector<256xf32>
    %27 = vector.shape_cast %26 : vector<256xf32> to vector<1x256xf32>
    %28 = arith.addf %22, %27 : vector<1x256xf32>
    %c0_13 = arith.constant 0 : index
    %c0_14 = arith.constant 0 : index
    %29 = vector.load %arg7[%c0_13, %c0_14] : memref<1x256xf32, #tpu.memory_space<vmem>>, vector<1x256xf32>
    tpu.vector_store %arg7[%c0_13, %c0_14], %28 {strides = array<i32>} : memref<1x256xf32, #tpu.memory_space<vmem>>, vector<1x256xf32>,
    %c0_15 = arith.constant 0 : index
    %c0_16 = arith.constant 0 : index
    %30 = vector.load %arg6[%c0_15, %c0_16] : memref<1x256xf32, #tpu.memory_space<vmem>>, vector<1x256xf32>
    tpu.vector_store %arg6[%c0_15, %c0_16], %18 {strides = array<i32>} : memref<1x256xf32, #tpu.memory_space<vmem>>, vector<1x256xf32>,
    %c0_17 = arith.constant 0 : index
    %c0_18 = arith.constant 0 : index
    %31 = vector.load %arg5[%c0_17, %c0_18] : memref<1x256xf32, #tpu.memory_space<vmem>>, vector<1x256xf32>
    %32 = vector.broadcast %14 : vector<1x256xi32> to vector<256x256xi32>
    %33 = arith.cmpi eq, %9, %32 : vector<256x256xi32>
    %cst_19 = arith.constant 0.000000e+00 : f32
    %34 = vector.broadcast %cst_19 : f32 to vector<256x256xf32>
    %35 = arith.select %33, %13, %34 : vector<256x256xi1>, vector<256x256xf32>
    %cst_20 = arith.constant dense<0.000000e+00> : vector<256xf32>
    %36 = vector.multi_reduction <add>, %35, %cst_20 [0] : vector<256x256xf32> to vector<256xf32>
    %37 = vector.shape_cast %36 : vector<256xf32> to vector<1x256xf32>
    %38 = arith.addf %31, %37 : vector<1x256xf32>
    %c0_21 = arith.constant 0 : index
    %c0_22 = arith.constant 0 : index
    %39 = vector.load %arg5[%c0_21, %c0_22] : memref<1x256xf32, #tpu.memory_space<vmem>>, vector<1x256xf32>
    tpu.vector_store %arg5[%c0_21, %c0_22], %38 {strides = array<i32>} : memref<1x256xf32, #tpu.memory_space<vmem>>, vector<1x256xf32>,
    %c1_i32 = arith.constant 1 : i32
    %40 = arith.cmpi eq, %arg1, %c1_i32 : i32
    %41 = arith.extui %40 : i1 to i32
    %c0_i32_23 = arith.constant 0 : i32
    %42 = arith.cmpi ne, %41, %c0_i32_23 : i32
    scf.if %42 {
      %c0_24 = arith.constant 0 : index
      %c0_25 = arith.constant 0 : index
      %43 = vector.load %arg6[%c0_24, %c0_25] : memref<1x256xf32, #tpu.memory_space<vmem>>, vector<1x256xf32>
      %c0_26 = arith.constant 0 : index
      %c0_27 = arith.constant 0 : index
      %44 = vector.load %arg7[%c0_26, %c0_27] : memref<1x256xf32, #tpu.memory_space<vmem>>, vector<1x256xf32>
      %45 = math.log %44 : vector<1x256xf32>
      %46 = arith.addf %43, %45 : vector<1x256xf32>
      %c0_i32_28 = arith.constant 0 : i32
      %47 = vector.broadcast %c0_i32_28 : i32 to vector<1x256xi32>
      %48 = arith.cmpi sge, %14, %47 : vector<1x256xi32>
      %49 = arith.extui %48 : vector<1x256xi1> to vector<1x256xi32>
      %50 = arith.sitofp %49 : vector<1x256xi32> to vector<1x256xf32>
      %c0_29 = arith.constant 0 : index
      %c0_30 = arith.constant 0 : index
      %51 = vector.load %arg5[%c0_29, %c0_30] : memref<1x256xf32, #tpu.memory_space<vmem>>, vector<1x256xf32>
      %52 = arith.subf %46, %51 : vector<1x256xf32>
      %53 = arith.mulf %52, %50 : vector<1x256xf32>
      %c0_31 = arith.constant 0 : index
      %c0_32 = arith.constant 0 : index
      %54 = vector.load %arg5[%c0_31, %c0_32] : memref<1x256xf32, #tpu.memory_space<vmem>>, vector<1x256xf32>
      tpu.vector_store %arg5[%c0_31, %c0_32], %53 {strides = array<i32>} : memref<1x256xf32, #tpu.memory_space<vmem>>, vector<1x256xf32>,
    } else {
    }
    return
  }
  func.func @transform_0(%arg0: i32, %arg1: i32) -> (i32, i32) {
    %c0_i32 = arith.constant 0 : i32
    %c0_i32_0 = arith.constant 0 : i32
    return %c0_i32, %arg0 : i32, i32
  }
  func.func @transform_1(%arg0: i32, %arg1: i32) -> (i32, i32) {
    %c0_i32 = arith.constant 0 : i32
    %c0_i32_0 = arith.constant 0 : i32
    return %arg1, %c0_i32 : i32, i32
  }
  func.func @transform_2(%arg0: i32, %arg1: i32) -> (i32, i32) {
    %c0_i32 = arith.constant 0 : i32
    %c0_i32_0 = arith.constant 0 : i32
    return %c0_i32, %arg0 : i32, i32
  }
  func.func @transform_3(%arg0: i32, %arg1: i32) -> (i32, i32) {
    %c0_i32 = arith.constant 0 : i32
    %c0_i32_0 = arith.constant 0 : i32
    return %c0_i32, %arg0 : i32, i32
  }
}

</mosaic_0001>

<bundles_post_ra>
// kernel: tpu_custom_call.1
= control target key start
LH: loop header
LB: loop body
LE: loop exit
PB: predicated region body
PF: predicated region fallthrough
CT: control target
= control target key end

     0   :  { %8 = vsyncpa [#allocation5], 0  ;;  %s3486_s0 = inlined_call_operand.hbm [shape: bf16[128,256], index: 0, kind: input, shape index: {}]   ;;  %s3487_s1 = inlined_call_operand.hbm [shape: bf16[512,128], index: 1, kind: input, shape index: {}]   ;;  %s3488_s2 = inlined_call_operand.vmem [shape: s32[1,256], index: 2, kind: input, shape index: {}]   ;;  %s3489_s3 = inlined_call_operand.hbm [shape: f32[1,256], index: 3, kind: output, shape index: {}]  }
   0x1   :  { %9 = vsyncpa [#allocation8], 0 }
   0x2   :  { %11 = vsyncpa [#allocation8 + $0x1], 0 }
   0x3   :  { %12 = vsyncpa [#allocation6], 0  ;;  %s2075_s12 = smov 0   ;;  %s2077_s13 = smov 0  }
   0x4   :  { %s2079_s14 = smov 0   ;;  %s2081_s15 = smov 0  }
   0x5   :  { %s2083_s16 = smov 0   ;;  %s2085_s17 = smov 0  }
   0x6 LB: > { %s1577_s18 = sadd.s32 4294967295, %s2041_s17   ;;  %p76_p0 = scmp.ne.s32.totalorder %s2025_s13, %s2021_s12  ;;  %s2041_s17 = sphi %s2085_s17, %s18_s17   ;;  %s2037_s16 = sphi %s2083_s16, %s3731_s16   ;;  %s2033_s15 = sphi %s2081_s15, %s3730_s15   ;;  %s2029_s14 = sphi %s2079_s14, %s3729_s14   ;;  %s2025_s13 = sphi %s2077_s13, %s3728_s13   ;;  %s2021_s12 = sphi %s2075_s12, %s3727_s12  }
   0x7   : > { %p2107_p1 = scmp.eq.s32.totalorder %s1577_s18, 0  ;;  %p1578_p2 = scmp.ge.s32.totalorder %s2041_s17, 1 }
   0x8   : > { %p139_p3 = scmp.lt.s32.totalorder %s2041_s17, 3  ;;  %s2043_s22 = smov [#allocation4]  }
   0x9   : > { %s3568_s19 = scalar_select %p2107_p1, 1, 0 }
   0xa   : > { %p2115_p4 = por %p2107_p1, %p76_p0  ;;  %p2119_p5 = pnand %p1578_p2, %p139_p3 }
   0xb   : > { %s154_s23 = sshll.u32 %s2043_s22, 4  ;;  %s27_s25 = sadd.s32 1, %s2037_s16  ;;  %s155_s23 = int_to_ptr.vmem [resolvable:$true] %s154_s23 }
   0xc   : > { %s3569_s20 = scalar_select %p2115_p4, 1, 0 }
   0xd   : > { %s3570_s21 = scalar_select %p2119_p5, 1, 0 }
   0xe   : > { %p1655_p6 = pneg %p2119_p5  ;;  %s1899_s28 = scalar_lea.hbm %s3486_s0, 2048 }
   0xf   : > { %p1900_p8 = scmp.ne.s32.totalorder %s3486_s0, %s1899_s28  ;;  %p1906_p12 = scmp.lt.u32.totalorder %s1899_s28, %s3486_s0 }
  0x10   : > { %p2127_p7 = pnand %p1655_p6, %p2107_p1 }
  0x12   : > { %p1901_p9 = pneg %p2127_p7 }
  0x14   : > { %p1902_p10 = pnand %p1901_p9, %p1900_p8 }
  0x16   : > { %p1903_p11 = pneg %p1902_p10 }
  0x18   : > { %p1908_p13 = pnand %p1906_p12, %p1903_p11 }
  0x1a   : > { %1911 = shalt.err (!%p1908_p13)
}
  0x1b   : > { %s1912_s6 = scalar_lea.vmem %s155_s23, 2048  ;;  %p1920_p6 = scmp.lt.s32.totalorder %s155_s23, %s155_s23 }
  0x1c   : > { %p1913_p0 = scmp.ne.s32.totalorder %s155_s23, %s1912_s6  ;;  %p1921_p4 = scmp.lt.s32.totalorder %s1912_s6, %s1912_s6 }
  0x1e   : > { %p1915_p2 = pnand %p1913_p0, %p1901_p9  ;;  %p1922_p1 = por %p1921_p4, %p1920_p6 }
  0x20   : > { %p1916_p3 = pneg %p1915_p2 }
  0x22   : > { %p1923_p5 = pnand %p1922_p1, %p1916_p3 }
  0x24   : > { %1926 = shalt.err (!%p1923_p5)
}
  0x25   : > { %s2044_s7 = smov 128   ;;  %s2045_s8 = smov 8  }
  0x26   : > { %1658 = dma.hbm_to_vmem [thread:$0]  (!%p2127_p7), %s3486_s0, 2048, %s155_s23, [#allocation5], %s2044_s7, %s2044_s7, %s2045_s8  }
  0x27   : > { %p28_p4 = scmp.ge.s32.totalorder %s27_s25, 2  ;;  %s63_s11 = sadd.s32 1, %s2029_s14 }
  0x28   : > { %p70_p1 = scmp.ne.s32.totalorder %s2029_s14, %s2025_s13  ;;  %p71_p5 = scmp.eq.s32.totalorder %s2041_s17, 0 }
  0x29   : > { %s3733_s25 = smov (%p28_p4, %s27_s25), 0  ;;  %p1664_p9 = scmp.lt.s32.totalorder %s2041_s17, 2 }
  0x2a   : > { %p72_p8 = por %p71_p5, %p70_p1  ;;  %s60_s12 = ssub.s32 %s2037_s16, %s3733_s25 }
  0x2b   : > { %s176_s22 = sand.u32 1, %s2029_s14   ;;  %p61_p10 = scmp.eq.s32.totalorder %s60_s12, 0 }
  0x2c   : > { %s1582_s26 = sshll.u32 %s176_s22, 7  ;;  %s1628_s27 = sshll.u32 %s2037_s16, 11 }
  0x2d   : > { %s2160_s28 = scalar_select %p61_p10, %s2029_s14, %s63_s11  }
  0x2e   : > { %s2165_s23 = scalar_lea.hbm %s3487_s1, %s1628_s27  ;;  %s180_s30 = scalar_lea.vmem [#allocation7], %s1582_s26 }
  0x2f   : > { %s187_s4 = sshll.u32 %s180_s30, 4  ;;  %p2167_p7 = pnand %p1664_p9, %p72_p8  ;;  %s2171_s4 = int_to_ptr.vmem [resolvable:$true] %s187_s4 }
  0x30   : > { %s2173_s6 = scalar_lea.sflag [#allocation8], %s176_s22  ;;  %s1927_s7 = scalar_lea.hbm %s2165_s23, 2048 }
  0x31   : > { %p1928_p11 = scmp.ne.s32.totalorder %s2165_s23, %s1927_s7  ;;  %p1929_p12 = pneg %p2167_p7 }
  0x32   : > { %s1932_s10 = scalar_lea.hbm %s3487_s1, 4096  ;;  %p1933_p2 = scmp.lt.u32.totalorder %s2165_s23, %s3487_s1 }
  0x33   : > { %p1930_p13 = pnand %p1929_p12, %p1928_p11  ;;  %p1934_p3 = scmp.lt.u32.totalorder %s1932_s10, %s1927_s7 }
  0x34   : > { %p1936_p4 = scmp.lt.u32.totalorder %s1927_s7, %s2165_s23 }
  0x35   : > { %p1931_p0 = pneg %p1930_p13  ;;  %p1935_p6 = por %p1934_p3, %p1933_p2 }
  0x37   : > { %p1937_p1 = por %p1936_p4, %p1935_p6 }
  0x39   : > { %p1938_p5 = pnand %p1937_p1, %p1931_p0 }
  0x3b   : > { %1941 = shalt.err (!%p1938_p5)
}
  0x3c   : > { %s1942_s22 = scalar_lea.vmem %s2171_s4, 2048  ;;  %s2046_s26 = smov [#allocation7]  }
  0x3d   : > { %p1943_p8 = scmp.ne.s32.totalorder %s2171_s4, %s1942_s22  ;;  %s1947_s27 = sshll.u32 %s2046_s26, 4  ;;  %s1948_s27 = int_to_ptr.vmem [resolvable:$false] %s1947_s27 }
  0x3e   : > { %s1949_s24 = scalar_lea.vmem %s1948_s27, 4096  ;;  %p1950_p11 = scmp.lt.s32.totalorder %s2171_s4, %s1948_s27 }
  0x3f   : > { %p1945_p9 = pnand %p1943_p8, %p1929_p12  ;;  %p1951_p13 = scmp.lt.s32.totalorder %s1949_s24, %s1942_s22 }
  0x41   : > { %p1946_p10 = pneg %p1945_p9  ;;  %p1952_p2 = por %p1951_p13, %p1950_p11 }
  0x43   : > { %p1953_p3 = pnand %p1952_p2, %p1946_p10 }
  0x45   : > { %1956 = shalt.err (!%p1953_p3)
}
  0x46   : > { %s2047_s29 = smov 64   ;;  %s2048_s30 = smov 4  }
  0x47   : > { %1662 = dma.hbm_to_vmem [thread:$0]  (!%p2167_p7), %s2165_s23, 2048, %s2171_s4, %s2173_s6, %s2047_s29, %s2047_s29, %s2048_s30  }
  0x48   : > { %p3573_p12 = scmp.ne.s32.totalorder %s3570_s21, 0 }
  0x4a   : > { %199 = sbr.rel (%p3573_p12) target bundleno = 597 (0x255), region = 32 }
  0x51   : > { %p3574_p0 = scmp.ne.s32.totalorder %s3568_s19, 0 }
  0x53   : > { %2008 = dma.done.wait (%p3574_p0), [#allocation5], 2048  }
  0x54   : > { %2010 = vsyncadd (%p3574_p0), [#allocation5], 4294965248  ;;  %s205_s7 = sand.u32 1, %s2025_s13   ;;  %p3575_p6 = scmp.ne.s32.totalorder %s3569_s20, 0 }
  0x55   : > { %s1587_s8 = sshll.u32 %s205_s7, 7  ;;  %s206_s9 = scalar_lea.sflag [#allocation8], %s205_s7 }
  0x56   : > { %s2208_s10 = scalar_lea.vmem [#allocation7], %s1587_s8 }
  0x57   : > { %2012 = dma.done.wait (%p3575_p6), %s206_s9, 2048  }
  0x58   : > { %2014 = vsyncadd (%p3575_p6), %s206_s9, 4294965248  ;;  %p1588_p7 = scmp.ne.s32.totalorder %s2033_s15, 0 }
  0x59   : > { %v244_v0 = vlaneseq (!%p1588_p7)  ;;  %v2049_v1 = vmov (!%p1588_p7), -inf   ;;  %v2050_v2 = vmov (!%p1588_p7), 0.0  }
  0x5a   : > { %243 = sbr.rel (%p1588_p7) target bundleno = 97 (0x61), region = 44 }
  0x5b   : > { %vm246_vm0 = vcmp.lt.s32.totalorder (!%p1588_p7), %v244_v0, 256 }
  0x5c   : > { %248 = vst.msk [vmem:[#allocation2] sm:$0x3] (!%p1588_p7), %vm246_vm0, %v2049_v1  ;;  %249 = vst.msk [vmem:[#allocation3] sm:$0x3] (!%p1588_p7), %vm246_vm0, %v2050_v2 }
  0x5d   : > { %250 = vst.msk [vmem:[#allocation9] sm:$0x3] (!%p1588_p7), %vm246_vm0, %v2050_v2 }
  0x61 PF: > { %v1727_v3 = vld [vmem:[#allocation4 + $0x4] ss:$8 sps:$4 sm:$0xff]   ;;  %v1729_v4 = vld [vmem:[#allocation4] ss:$8 sps:$4 sm:$0xff]   ;;  %v2051_v5 = vmov 0   ;;  %v1754_v24 = vld [vmem:[%s2208_s10 + $0x10] sm:$0xff]   ;;  %v3496_v36 = vlaneseq }
  0x62   : > { %507 = vmatprep.mubr.bf16.mxu0 %v2051_v5  ;;  %587 = vmatprep.mubr.bf16.mxu1 %v2051_v5  ;;  %v1730_v6 = vld [vmem:[#allocation4 + $0x14] ss:$8 sps:$4 sm:$0xff]   ;;  %v1732_v7 = vld [vmem:[#allocation4 + $0x10] ss:$8 sps:$4 sm:$0xff]   ;;  %v1733_v8 = vld [vmem:[#allocation4 + $0x24] ss:$8 sps:$4 sm:$0xff]  }
  0x63   : > { %475 = vmatprep.subr.bf16.mxu0 %v1727_v3  ;;  %1629 = vmatprep.subr.bf16.mxu1 %v1727_v3  ;;  %v1735_v9 = vld [vmem:[#allocation4 + $0x20] ss:$8 sps:$4 sm:$0xff]   ;;  %v1736_v10 = vld [vmem:[#allocation4 + $0x34] ss:$8 sps:$4 sm:$0xff]   ;;  %v1738_v11 = vld [vmem:[#allocation4 + $0x30] ss:$8 sps:$4 sm:$0xff]  }
  0x64   : > { %476 = vmatpush1.bf16.msra.mxu0 %v1729_v4  ;;  %1637 = vmatpush1.bf16.msra.mxu1 %v1729_v4  ;;  %v1739_v12 = vld [vmem:[#allocation4 + $0x44] ss:$8 sps:$4 sm:$0xff]   ;;  %v1741_v13 = vld [vmem:[#allocation4 + $0x40] ss:$8 sps:$4 sm:$0xff]   ;;  %v1742_v14 = vld [vmem:[#allocation4 + $0x54] ss:$8 sps:$4 sm:$0xff]  }
  0x65   : > { %477 = vmatprep.subr.bf16.mxu0 %v1730_v6  ;;  %1630 = vmatprep.subr.bf16.mxu1 %v1730_v6  ;;  %v1744_v15 = vld [vmem:[#allocation4 + $0x50] ss:$8 sps:$4 sm:$0xff]   ;;  %v1745_v16 = vld [vmem:[#allocation4 + $0x64] ss:$8 sps:$4 sm:$0xff]   ;;  %v1747_v17 = vld [vmem:[#allocation4 + $0x60] ss:$8 sps:$4 sm:$0xff]  }
  0x66   : > { %v1748_v18 = vld [vmem:[#allocation4 + $0x74] ss:$8 sps:$4 sm:$0xff]   ;;  %v1750_v19 = vld [vmem:[#allocation4 + $0x70] ss:$8 sps:$4 sm:$0xff]   ;;  %v1751_v20 = vld [vmem:[%s2208_s10] sm:$0xff]   ;;  %v2248_v37 = vshrl.u32 %v3496_v36, 7 }
  0x67   : > { %v1753_v21 = vld [vmem:[%s2208_s10 + $0x40] sm:$0xff]   ;;  %v1752_v22 = vld [vmem:[%s2208_s10 + $0x8] sm:$0xff]   ;;  %v1757_v25 = vld [vmem:[%s2208_s10 + $0x50] sm:$0xff]   ;;  %s1621_s19 = sshll.u32 %s2033_s15, 8  ;;  %p1622_p4 = scmp.ne.s32.totalorder %s2033_s15, 1 }
  0x68   : > { %478 = vmatpush1.bf16.msra.mxu0 %v1732_v7  ;;  %1638 = vmatpush1.bf16.msra.mxu1 %v1732_v7  ;;  %v1755_v23 = vld [vmem:[%s2208_s10 + $0x48] sm:$0xff]   ;;  %v1756_v26 = vld [vmem:[%s2208_s10 + $0x18] sm:$0xff]   ;;  %v1758_v28 = vld [vmem:[%s2208_s10 + $0x20] sm:$0xff]   ;;  %v671_v38 = vadd.s32 8, %v2248_v37  ;;  %v2252_v39 = vstv %s1621_s19  ;;  %v672_v40 = vadd.s32 16, %v2248_v37  ;;  %v686_v41 = vadd.s32 128, %v2248_v37 }
  0x69   : > { %479 = vmatprep.subr.bf16.mxu0 %v1733_v8  ;;  %1631 = vmatprep.subr.bf16.mxu1 %v1733_v8  ;;  %v1759_v27 = vld [vmem:[%s2208_s10 + $0x58] sm:$0xff]   ;;  %v1761_v29 = vld [vmem:[%s2208_s10 + $0x60] sm:$0xff]   ;;  %v1760_v30 = vld [vmem:[%s2208_s10 + $0x28] sm:$0xff]   ;;  %v687_v42 = vadd.s32 136, %v2248_v37  ;;  %v3495_v43 = vsub.s32 0, %v2248_v37  ;;  %v2260_v44 = vadd.s32 %v2252_v39, %v2248_v37  ;;  %v3494_v46 = vsub.s32 1, %v2248_v37 }
  0x6a   : > { %v1763_v31 = vld [vmem:[%s2208_s10 + $0x68] sm:$0xff]   ;;  %v1762_v32 = vld [vmem:[%s2208_s10 + $0x30] sm:$0xff]   ;;  %v1764_v34 = vld [vmem:[%s2208_s10 + $0x38] sm:$0xff]   ;;  %v2269_v47 = vadd.s32 %v2252_v39, %v671_v38  ;;  %v673_v48 = vadd.s32 24, %v2248_v37  ;;  %v2273_v49 = vadd.s32 %v2252_v39, %v672_v40  ;;  %v2276_v50 = vadd.s32 %v2252_v39, %v686_v41 }
  0x6b   : > { %v1765_v33 = vld [vmem:[%s2208_s10 + $0x70] sm:$0xff]   ;;  %v1766_v35 = vld [vmem:[%s2208_s10 + $0x78] sm:$0xff]   ;;  %v688_v51 = vadd.s32 144, %v2248_v37  ;;  %v2284_v54 = vadd.s32 %v2252_v39, %v687_v42  ;;  %v674_v55 = vadd.s32 32, %v2248_v37  ;;  %v689_v59 = vadd.s32 152, %v2248_v37 }
  0x6c   : > { %480 = vmatpush1.bf16.msra.mxu0 %v1735_v9  ;;  %1639 = vmatpush1.bf16.msra.mxu1 %v1735_v9  ;;  %v2265_v45 = vld [vmem:[%s3488_s2] sm:$0x3]  ;;  %vm735_vm1 = vcmp.lt.s32.totalorder %v2260_v44, 384  ;;  %vm736_vm2 = vcmp.lt.s32.totalorder %v2269_v47, 384  ;;  %v2305_v62 = vadd.s32 %v2252_v39, %v673_v48  ;;  %vm737_vm4 = vcmp.lt.s32.totalorder %v2273_v49, 384 }
  0x6d   : > { %481 = vmatprep.subr.bf16.mxu0 %v1736_v10  ;;  %1632 = vmatprep.subr.bf16.mxu1 %v1736_v10  ;;  %3576 = vst [vmem:[#allocation13_spill] sm:$0xff] %v2265_v45  ;;  %v2290_v56 = vrot.slane %v2265_v45, %v3495_v43  ;;  %v2301_v60 = vrot.slane %v2265_v45, %v3494_v46  ;;  %vm751_vm5 = vcmp.lt.s32.totalorder %v2276_v50, 384  ;;  %vm752_vm7 = vcmp.lt.s32.totalorder %v2284_v54, 384 }
  0x6e   : > { %v2314_v1 = vadd.s32 %v2252_v39, %v688_v51  ;;  %v2320_v2 = vadd.s32 %v2252_v39, %v674_v55  ;;  %v675_v3 = vadd.s32 40, %v2248_v37  ;;  %v690_v4 = vadd.s32 160, %v2248_v37 }
  0x6f   : > { %vm1244_vm3 = vcmp.eq.s32.totalorder %v2269_v47, %v2290_v56  ;;  %vm1245_vm6 = vcmp.eq.s32.totalorder %v2269_v47, %v2301_v60  ;;  %vm1242_vm8 = vcmp.eq.s32.totalorder %v2260_v44, %v2290_v56  ;;  %vm1246_vm9 = vcmp.eq.s32.totalorder %v2273_v49, %v2290_v56 }
  0x70   : > { %482 = vmatpush1.bf16.msra.mxu0 %v1738_v11  ;;  %1640 = vmatpush1.bf16.msra.mxu1 %v1738_v11  ;;  %v2329_v6 = vadd.s32 %v2252_v39, %v689_v59  ;;  %v676_v7 = vadd.s32 48, %v2248_v37  ;;  %v677_v8 = vadd.s32 56, %v2248_v37  ;;  %v691_v9 = vadd.s32 168, %v2248_v37 }
  0x71   : > { %483 = vmatprep.subr.bf16.mxu0 %v1739_v12  ;;  %1633 = vmatprep.subr.bf16.mxu1 %v1739_v12  ;;  %vm1243_vm10 = vcmp.eq.s32.totalorder %v2260_v44, %v2301_v60  ;;  %vm1247_vm11 = vcmp.eq.s32.totalorder %v2273_v49, %v2301_v60  ;;  %vm738_vm12 = vcmp.lt.s32.totalorder %v2305_v62, 384  ;;  %v678_v10 = vadd.s32 64, %v2248_v37 }
  0x72   : > { %v692_v11 = vadd.s32 176, %v2248_v37  ;;  %v693_v12 = vadd.s32 184, %v2248_v37  ;;  %vm753_vm13 = vcmp.lt.s32.totalorder %v2314_v1, 384  ;;  %vm739_vm14 = vcmp.lt.s32.totalorder %v2320_v2, 384 }
  0x73   : > { %vm1251_vm15 = vcmp.eq.s32.totalorder %v2320_v2, %v2301_v60  ;;  %v697_v59 = vadd.s32 216, %v2248_v37 }
  0x74   : > { %484 = vmatpush1.bf16.msra.mxu0 %v1741_v13  ;;  %1641 = vmatpush1.bf16.msra.mxu1 %v1741_v13  ;;  %v694_v13 = vadd.s32 192, %v2248_v37 }
  0x75   : > { %485 = vmatprep.subr.bf16.mxu0 %v1742_v14  ;;  %1634 = vmatprep.subr.bf16.mxu1 %v1742_v14  ;;  %v679_v14 = vadd.s32 72, %v2248_v37 }
  0x77   : > { %v2395_v40 = vadd.s32 %v2252_v39, %v679_v14 }
  0x78   : > { %486 = vmatpush1.bf16.msra.mxu0 %v1744_v15  ;;  %1642 = vmatpush1.bf16.msra.mxu1 %v1744_v15  ;;  %v680_v15 = vadd.s32 80, %v2248_v37 }
  0x79   : > { %487 = vmatprep.subr.bf16.mxu0 %v1745_v16  ;;  %1635 = vmatprep.subr.bf16.mxu1 %v1745_v16  ;;  %v695_v16 = vadd.s32 200, %v2248_v37 }
  0x7a   : > { %v2398_v41 = vadd.s32 %v2252_v39, %v680_v15 }
  0x7b   : > { %v2401_v42 = vadd.s32 %v2252_v39, %v695_v16 }
  0x7c   : > { %488 = vmatpush1.bf16.msra.mxu0 %v1747_v17  ;;  %1643 = vmatpush1.bf16.msra.mxu1 %v1747_v17 }
  0x7d   : > { %489 = vmatprep.subr.bf16.mxu0 %v1748_v18  ;;  %1636 = vmatprep.subr.bf16.mxu1 %v1748_v18  ;;  %v2349_v18 = vadd.s32 %v2252_v39, %v675_v3 }
  0x80   : > { %490 = vmatpush1.bf16.msra.mxu0 %v1750_v19  ;;  %1644 = vmatpush1.bf16.msra.mxu1 %v1750_v19 }
  0x83   : > { %508 = vmatmul.mubr.bf16.vlgmr.msra.gmra.mrb[0].mxu0 %v1751_v20  ;;  %588 = vmatmul.mubr.bf16.vlgmr.msra.gmra.mrb[0].mxu1 %v1753_v21  ;;  %v2352_v20 = vadd.s32 %v2252_v39, %v690_v4  ;;  %v696_v21 = vadd.s32 208, %v2248_v37 }
  0x84   : > { %517 = vmatprep.mubr.bf16.mxu0 %v2051_v5  ;;  %597 = vmatprep.mubr.bf16.mxu1 %v2051_v5 }
  0x85   : > { %v2416_v55 = vadd.s32 %v2252_v39, %v696_v21  ;;  %vm755_vm0 = vcmp.lt.s32.totalorder %v2352_v20, 384 }
  0x8b   : > { %518 = vmatmul.mubr.bf16.gmra.mrb[4].mxu0 %v1752_v22  ;;  %598 = vmatmul.mubr.bf16.gmra.mrb[4].mxu1 %v1755_v23 }
  0x8c   : > { %527 = vmatprep.mubr.bf16.mxu0 %v2051_v5  ;;  %607 = vmatprep.mubr.bf16.mxu1 %v2051_v5 }
  0x93   : > { %528 = vmatmul.mubr.bf16.gmra.mrb[8].mxu0 %v1754_v24  ;;  %608 = vmatmul.mubr.bf16.gmra.mrb[8].mxu1 %v1757_v25  ;;  %v2360_v24 = vadd.s32 %v2252_v39, %v676_v7  ;;  %v2363_v25 = vadd.s32 %v2252_v39, %v677_v8 }
  0x94   : > { %537 = vmatprep.mubr.bf16.mxu0 %v2051_v5  ;;  %617 = vmatprep.mubr.bf16.mxu1 %v2051_v5 }
  0x9b   : > { %538 = vmatmul.mubr.bf16.gmra.mrb[12].mxu0 %v1756_v26  ;;  %618 = vmatmul.mubr.bf16.gmra.mrb[12].mxu1 %v1759_v27  ;;  %v2366_v26 = vadd.s32 %v2252_v39, %v691_v9  ;;  %v681_v27 = vadd.s32 88, %v2248_v37 }
  0x9c   : > { %547 = vmatprep.mubr.bf16.mxu0 %v2051_v5  ;;  %627 = vmatprep.mubr.bf16.mxu1 %v2051_v5 }
  0x9d   : > { %v2434_v3 = vadd.s32 %v2252_v39, %v681_v27 }
  0xa3   : > { %548 = vmatmul.mubr.bf16.gmra.mrb[16].mxu0 %v1758_v28  ;;  %628 = vmatmul.mubr.bf16.gmra.mrb[16].mxu1 %v1761_v29 }
  0xa4   : > { %557 = vmatprep.mubr.bf16.mxu0 %v2051_v5  ;;  %637 = vmatprep.mubr.bf16.mxu1 %v2051_v5 }
  0xab   : > { %558 = vmatmul.mubr.bf16.gmra.mrb[20].mxu0 %v1760_v30  ;;  %638 = vmatmul.mubr.bf16.gmra.mrb[20].mxu1 %v1763_v31  ;;  %v2375_v30 = vadd.s32 %v2252_v39, %v678_v10  ;;  %v2378_v31 = vadd.s32 %v2252_v39, %v692_v11  ;;  %v683_v10 = vadd.s32 104, %v2248_v37 }
  0xac   : > { %567 = vmatprep.mubr.bf16.mxu0 %v2051_v5  ;;  %647 = vmatprep.mubr.bf16.mxu1 %v2051_v5 }
  0xb3   : > { %568 = vmatmul.mubr.bf16.gmra.mrb[24].mxu0 %v1762_v32  ;;  %648 = vmatmul.mubr.bf16.gmra.mrb[24].mxu1 %v1765_v33  ;;  %v2381_v32 = vadd.s32 %v2252_v39, %v693_v12  ;;  %v2384_v33 = vadd.s32 %v2252_v39, %v694_v13 }
  0xb4   : > { %577 = vmatprep.mubr.bf16.mxu0 %v2051_v5  ;;  %657 = vmatprep.mubr.bf16.mxu1 %v2051_v5 }
  0xbb   : > { %578 = vmatmul.mubr.bf16.gmra.mrb[28].mxu0 %v1764_v34  ;;  %658 = vmatmul.mubr.bf16.gmra.mrb[28].mxu1 %v1766_v35 }
 0x156   : > { %v2279_v52 = vpop.f32.mrb[0].mxu0  ;;  %v2281_v53 = vpop.f32.mrb[0].mxu1 }
 0x157   : > { %v2292_v57 = vpop.f32.mrb[1].mxu0  ;;  %v2294_v58 = vpop.f32.mrb[1].mxu1  ;;  %v2406_v48 = vsel %vm735_vm1, %v2279_v52, -1e+30  ;;  %v2426_v52 = vsel %vm751_vm5, %v2281_v53, -1e+30 }
 0x158   : > { %v513_v61 = vpop.f32.mrb[2].mxu0  ;;  %v2307_v63 = vpop.f32.mrb[2].mxu1  ;;  %3578 = vst [vmem:[#allocation15_spill] sm:$0xff] %v2406_v48  ;;  %3581 = vst [vmem:[#allocation18_spill] sm:$0xff] %v2426_v52  ;;  %v2439_v4 = vsel %vm735_vm1, %v2292_v57, -1e+30  ;;  %vm1252_vm1 = vcmp.eq.s32.totalorder %v2349_v18, %v2290_v56 }
 0x159   : > { %v515_v0 = vpop.f32.mrb[3].mxu0  ;;  %v595_v5 = vpop.f32.mrb[3].mxu1  ;;  %v2388_v34 = vsel %vm736_vm2, %v513_v61, -1e+30  ;;  %3583 = vst [vmem:[#allocation20_spill] sm:$0xff] %v2439_v4  ;;  %v1306_v47 = vsel %vm1242_vm8, %v2406_v48, 0.0  ;;  %vm3592_vm8 = vcmp.eq.s32.totalorder %v2305_v62, %v2290_v56 }
 0x15a   : > { %3577 = vst [vmem:[#allocation14_spill] sm:$0xff] %v2388_v34  ;;  %v2410_v51 = vsel %vm736_vm2, %v515_v0, -1e+30  ;;  %v2431_v0 = vsel %vm752_vm7, %v2307_v63, -1e+30  ;;  %v1308_v7 = vsel %vm1244_vm3, %v2388_v34, 0.0  ;;  %vm1253_vm3 = vcmp.eq.s32.totalorder %v2349_v18, %v2301_v60 }
 0x15b   : > { %3579 = vst [vmem:[#allocation16_spill] sm:$0xff] %v2410_v51  ;;  %3582 = vst [vmem:[#allocation19_spill] sm:$0xff] %v2431_v0  ;;  %vm741_vm2 = vcmp.lt.s32.totalorder %v2360_v24, 384  ;;  %v682_v63 = vadd.s32 96, %v2248_v37  ;;  %v1309_v57 = vsel %vm1245_vm6, %v2410_v51, 0.0  ;;  %v847_v11 = vmax.f32 %v2431_v0, %v2426_v52 }
 0x15c   : > { %v2459_v8 = vsel %vm751_vm5, %v2294_v58, -1e+30  ;;  %v2463_v9 = vsel %vm752_vm7, %v595_v5, -1e+30  ;;  %v1307_v14 = vsel %vm1243_vm10, %v2439_v4, 0.0  ;;  %v1370_v15 = vadd.f32 %v1308_v7, %v1306_v47 }
 0x15d   : > { %3585 = vst [vmem:[#allocation22_spill] sm:$0xff] %v2459_v8  ;;  %3586 = vst [vmem:[#allocation23_spill] sm:$0xff] %v2463_v9  ;;  %v884_v27 = vmax.f32 %v2463_v9, %v2459_v8  ;;  %vm1255_vm5 = vcmp.eq.s32.totalorder %v2360_v24, %v2301_v60  ;;  %vm742_vm6 = vcmp.lt.s32.totalorder %v2363_v25, 384  ;;  %vm756_vm7 = vcmp.lt.s32.totalorder %v2366_v26, 384 }
 0x15e   : > { %v519_v17 = vpop.f32.mrb[4].mxu0  ;;  %v599_v19 = vpop.f32.mrb[4].mxu1  ;;  %v2525_v43 = vadd.s32 %v2252_v39, %v682_v63  ;;  %vm3595_vm10 = vcmp.lt.s32.totalorder %v2329_v6, 384 }
 0x15f   : > { %v521_v22 = vpop.f32.mrb[5].mxu0  ;;  %v2357_v23 = vpop.f32.mrb[5].mxu1  ;;  %v2421_v61 = vsel %vm737_vm4, %v519_v17, -1e+30  ;;  %v2482_v12 = vsel %vm753_vm13, %v599_v19, -1e+30 }
 0x160   : > { %v523_v28 = vpop.f32.mrb[6].mxu0  ;;  %v2371_v29 = vpop.f32.mrb[6].mxu1  ;;  %3580 = vst [vmem:[#allocation17_spill] sm:$0xff] %v2421_v61  ;;  %v2447_v53 = vsel %vm737_vm4, %v521_v22, -1e+30  ;;  %v1310_v58 = vsel %vm1246_vm9, %v2421_v61, 0.0  ;;  %vm1254_vm4 = vcmp.eq.s32.totalorder %v2360_v24, %v2290_v56  ;;  %v1407_v22 = vadd.f32 %v1309_v57, %v1307_v14 }
 0x161   : > { %v525_v35 = vpop.f32.mrb[7].mxu0  ;;  %v2392_v38 = vpop.f32.mrb[7].mxu1  ;;  %3584 = vst [vmem:[#allocation21_spill] sm:$0xff] %v2447_v53  ;;  %3587 = vst [vmem:[#allocation24_spill] sm:$0xff] %v2482_v12  ;;  %v1311_v16 = vsel %vm1247_vm11, %v2447_v53, 0.0  ;;  %v1371_v47 = vadd.f32 %v1370_v15, %v1310_v58  ;;  %vm3594_vm9 = vcmp.eq.s32.totalorder %v2305_v62, %v2301_v60  ;;  %vm1256_vm11 = vcmp.eq.s32.totalorder %v2363_v25, %v2290_v56 }
 0x162   : > { %v2494_v17 = vsel %vm738_vm12, %v523_v28, -1e+30  ;;  %v2500_v44 = vsel %vm738_vm12, %v525_v35, -1e+30  ;;  %v2510_v28 = vadd.s32 %v2252_v39, %v697_v59  ;;  %v2519_v14 = vsel %vm753_vm13, %v2357_v23, -1e+30 }
 0x163   : > { %3588 = vst [vmem:[#allocation25_spill] sm:$0xff] %v2494_v17  ;;  %3589 = vst [vmem:[#allocation26_spill] sm:$0xff] %v2500_v44  ;;  %v1408_v59 = vadd.f32 %v1407_v22, %v1311_v16  ;;  %v1312_v58 = vsel %vm3592_vm8, %v2494_v17, 0.0  ;;  %v849_v23 = vmax.f32 %v847_v11, %v2482_v12  ;;  %v1313_v15 = vsel %vm3594_vm9, %v2500_v44, 0.0 }
 0x164   : > { %3591 = vst [vmem:[#allocation28_spill] sm:$0xff] %v2519_v14  ;;  %v2543_v63 = vsel %vm3595_vm10, %v2371_v29, -1e+30  ;;  %vm1257_vm12 = vcmp.eq.s32.totalorder %v2363_v25, %v2301_v60  ;;  %vm757_vm13 = vcmp.lt.s32.totalorder %v2378_v31, 384  ;;  %v2551_v11 = vadd.s32 %v2252_v39, %v683_v10 }
 0x165   : > { %3596 = vst [vmem:[#allocation30_spill] sm:$0xff] %v2543_v63  ;;  %v684_v16 = vadd.s32 112, %v2248_v37  ;;  %v886_v29 = vmax.f32 %v884_v27, %v2519_v14  ;;  %v698_v22 = vadd.s32 224, %v2248_v37  ;;  %v1372_v36 = vadd.f32 %v1371_v47, %v1312_v58 }
 0x166   : > { %v529_v5 = vpop.f32.mrb[8].mxu0  ;;  %v609_v13 = vpop.f32.mrb[8].mxu1  ;;  %vm3598_vm9 = vcmp.lt.s32.totalorder %v2349_v18, 384  ;;  %v2573_v27 = vsel %vm3595_vm10, %v2392_v38, -1e+30  ;;  %v1409_v14 = vadd.f32 %v1408_v59, %v1313_v15  ;;  %v699_v38 = vadd.s32 232, %v2248_v37 }
 0x167   : > { %v531_v21 = vpop.f32.mrb[9].mxu0  ;;  %v611_v19 = vpop.f32.mrb[9].mxu1  ;;  %v2514_v57 = vsel %vm739_vm14, %v529_v5, -1e+30  ;;  %3600 = vst [vmem:[#allocation32_spill] sm:$0xff] %v2573_v27  ;;  %vm3601_vm8 = vmmov %vm3598_vm9  ;;  %v2596_v15 = vadd.s32 %v2252_v39, %v684_v16  ;;  %v833_v18 = vmax.f32 %v2406_v48, %v2421_v61  ;;  %v834_v24 = vmax.f32 %v2388_v34, %v2494_v17 }
 0x168   : > { %v533_v7 = vpop.f32.mrb[10].mxu0  ;;  %v2507_v49 = vpop.f32.mrb[10].mxu1  ;;  %3590 = vst [vmem:[#allocation27_spill] sm:$0xff] %v2514_v57  ;;  %v2533_v5 = vsel %vm739_vm14, %v531_v21, -1e+30  ;;  %vm3597_vm14 = vcmp.eq.s32.totalorder %v2320_v2, %v2290_v56  ;;  %v685_v21 = vadd.s32 120, %v2248_v37  ;;  %v851_v2 = vmax.f32 %v849_v23, %v2543_v63 }
 0x169   : > { %v535_v35 = vpop.f32.mrb[11].mxu0  ;;  %v2522_v46 = vpop.f32.mrb[11].mxu1  ;;  %3593 = vst [vmem:[#allocation29_spill] sm:$0xff] %v2533_v5  ;;  %v1314_v62 = vsel %vm3597_vm14, %v2514_v57, 0.0  ;;  %v1315_v10 = vsel %vm1251_vm15, %v2533_v5, 0.0  ;;  %vm1258_vm14 = vcmp.eq.s32.totalorder %v2375_v30, %v2290_v56  ;;  %vm1259_vm15 = vcmp.eq.s32.totalorder %v2375_v30, %v2301_v60 }
 0x16a   : > { %v2568_v45 = vsel %vm3598_vm9, %v533_v7, -1e+30  ;;  %v2579_v47 = vsel %vm3601_vm8, %v535_v35, -1e+30  ;;  %vm744_vm9 = vcmp.lt.s32.totalorder %v2395_v40, 384  ;;  %v1373_v12 = vadd.f32 %v1372_v36, %v1314_v62 }
 0x16b   : > { %3599 = vst [vmem:[#allocation31_spill] sm:$0xff] %v2568_v45  ;;  %3602 = vst [vmem:[#allocation33_spill] sm:$0xff] %v2579_v47  ;;  %v2592_v35 = vsel %vm755_vm0, %v609_v13, -1e+30  ;;  %vm758_vm8 = vcmp.lt.s32.totalorder %v2381_v32, 384  ;;  %v1410_v63 = vadd.f32 %v1409_v14, %v1315_v10  ;;  %v1316_v36 = vsel %vm1252_vm1, %v2568_v45, 0.0 }
 0x16c   : > { %3604 = vst [vmem:[#allocation35_spill] sm:$0xff] %v2592_v35  ;;  %v888_v62 = vmax.f32 %v886_v29, %v2573_v27  ;;  %v1317_v16 = vsel %vm1253_vm3, %v2579_v47, 0.0  ;;  %v2613_v14 = vsel %vm755_vm0, %v611_v19, -1e+30  ;;  %vm1260_vm1 = vcmp.eq.s32.totalorder %v2395_v40, %v2290_v56 }
 0x16d   : > { %v2621_v10 = vadd.s32 %v2252_v39, %v685_v21  ;;  %v848_v27 = vmax.f32 %v2592_v35, %v851_v2  ;;  %vm1261_vm0 = vcmp.eq.s32.totalorder %v2395_v40, %v2301_v60  ;;  %v2636_v52 = vadd.s32 %v2252_v39, %v699_v38 }
 0x16e   : > { %v539_v58 = vpop.f32.mrb[12].mxu0  ;;  %v619_v7 = vpop.f32.mrb[12].mxu1  ;;  %v1374_v21 = vadd.f32 %v1373_v12, %v1316_v36  ;;  %v870_v2 = vmax.f32 %v2439_v4, %v2447_v53  ;;  %v1411_v35 = vadd.f32 %v1410_v63, %v1317_v16  ;;  %v883_v38 = vmax.f32 %v2613_v14, %v888_v62 }
 0x16f   : > { %v2588_v9 = vsel %vm741_vm2, %v539_v58, -1e+30  ;;  %v541_v59 = vpop.f32.mrb[13].mxu0  ;;  %v621_v23 = vpop.f32.mrb[13].mxu1  ;;  %v2656_v12 = vsel %vm756_vm7, %v2507_v49, -1e+30 }
 0x170   : > { %3603 = vst [vmem:[#allocation34_spill] sm:$0xff] %v2588_v9  ;;  %v2605_v58 = vsel %vm741_vm2, %v541_v59, -1e+30  ;;  %v543_v13 = vpop.f32.mrb[14].mxu0  ;;  %v623_v0 = vpop.f32.mrb[14].mxu1  ;;  %vm759_vm2 = vcmp.lt.s32.totalorder %v2384_v33, 384  ;;  %v2624_v59 = vadd.s32 %v2252_v39, %v698_v22  ;;  %v872_v17 = vmax.f32 %v870_v2, %v2533_v5 }
 0x171   : > { %3605 = vst [vmem:[#allocation36_spill] sm:$0xff] %v2605_v58  ;;  %v545_v8 = vpop.f32.mrb[15].mxu0  ;;  %v2617_v29 = vpop.f32.mrb[15].mxu1  ;;  %v1318_v19 = vsel %vm1254_vm4, %v2588_v9, 0.0  ;;  %v1319_v22 = vsel %vm1255_vm5, %v2605_v58, 0.0  ;;  %vm745_vm3 = vcmp.lt.s32.totalorder %v2398_v41, 384  ;;  %vm1262_vm4 = vcmp.eq.s32.totalorder %v2398_v41, %v2290_v56 }
 0x172   : > { %v2644_v61 = vsel %vm742_vm6, %v543_v13, -1e+30  ;;  %v2648_v48 = vsel %vm742_vm6, %v545_v8, -1e+30  ;;  %v871_v8 = vmax.f32 %v2410_v51, %v2500_v44  ;;  %v1375_v36 = vadd.f32 %v1374_v21, %v1318_v19 }
 0x173   : > { %3606 = vst [vmem:[#allocation37_spill] sm:$0xff] %v2644_v61  ;;  %3607 = vst [vmem:[#allocation38_spill] sm:$0xff] %v2648_v48  ;;  %v2666_v63 = vsel %vm756_vm7, %v2522_v46, -1e+30  ;;  %v1412_v62 = vadd.f32 %v1411_v35, %v1319_v22  ;;  %v1320_v49 = vsel %vm1256_vm11, %v2644_v61, 0.0  ;;  %v1321_v13 = vsel %vm1257_vm12, %v2648_v48, 0.0 }
 0x174   : > { %v2680_v19 = vsel %vm757_vm13, %v619_v7, -1e+30  ;;  %vm1263_vm5 = vcmp.eq.s32.totalorder %v2398_v41, %v2301_v60  ;;  %vm746_vm6 = vcmp.lt.s32.totalorder %v2434_v3, 384  ;;  %v835_v35 = vmax.f32 %v833_v18, %v2514_v57 }
 0x175   : > { %v850_v21 = vmax.f32 %v848_v27, %v2656_v12  ;;  %vm3608_vm7 = vcmp.lt.s32.totalorder %v2375_v30, 384  ;;  %v2693_v44 = vsel %vm757_vm13, %v621_v23, -1e+30  ;;  %vm1264_vm11 = vcmp.eq.s32.totalorder %v2434_v3, %v2290_v56 }
 0x176   : > { %v549_v16 = vpop.f32.mrb[16].mxu0  ;;  %v629_v46 = vpop.f32.mrb[16].mxu1  ;;  %v885_v18 = vmax.f32 %v883_v38, %v2666_v63  ;;  %vm3610_vm12 = vmmov %vm3608_vm7  ;;  %vm1265_vm13 = vcmp.eq.s32.totalorder %v2434_v3, %v2301_v60  ;;  %v1376_v53 = vadd.f32 %v1375_v36, %v1320_v49  ;;  %vm762_vm10 = vcmp.lt.s32.totalorder %v2510_v28, 384 }
 0x177   : > { %v2689_v22 = vsel %vm3608_vm7, %v549_v16, -1e+30  ;;  %v551_v25 = vpop.f32.mrb[17].mxu0  ;;  %v2697_v7 = vpop.f32.mrb[17].mxu1  ;;  %v1413_v34 = vadd.f32 %v1412_v62, %v1321_v13  ;;  %v2734_v30 = vsel %vm758_vm8, %v623_v0, -1e+30  ;;  %vm1296_vm7 = vcmp.eq.s32.totalorder %v2510_v28, %v2290_v56 }
 0x178   : > { %3609 = vst [vmem:[#allocation39_spill] sm:$0xff] %v2689_v22  ;;  %v1322_v27 = vsel %vm1258_vm14, %v2689_v22, 0.0  ;;  %v2707_v16 = vsel %vm3610_vm12, %v551_v25, -1e+30  ;;  %v553_v23 = vpop.f32.mrb[18].mxu0  ;;  %v2711_v57 = vpop.f32.mrb[18].mxu1  ;;  %v852_v25 = vmax.f32 %v850_v21, %v2680_v19  ;;  %v2730_v49 = vmax.f32 %v885_v18, %v2693_v44 }
 0x179   : > { %3611 = vst [vmem:[#allocation40_spill] sm:$0xff] %v2707_v16  ;;  %v1323_v2 = vsel %vm1259_vm15, %v2707_v16, 0.0  ;;  %v2719_v5 = vsel %vm744_vm9, %v553_v23, -1e+30  ;;  %v555_v38 = vpop.f32.mrb[19].mxu0  ;;  %v2722_v51 = vpop.f32.mrb[19].mxu1  ;;  %vm1295_vm15 = vcmp.eq.s32.totalorder %v2416_v55, %v2301_v60  ;;  %v836_v62 = vmax.f32 %v834_v24, %v2568_v45 }
 0x17a   : > { %v2727_v36 = vsel %vm744_vm9, %v555_v38, -1e+30  ;;  %vm760_vm14 = vcmp.lt.s32.totalorder %v2401_v42, 384  ;;  %v873_v13 = vmax.f32 %v871_v8, %v2579_v47  ;;  %v1377_v21 = vadd.f32 %v1376_v53, %v1322_v27 }
 0x17b   : > { %v2748_v0 = vsel %vm758_vm8, %v2617_v29, -1e+30  ;;  %vm761_vm9 = vcmp.lt.s32.totalorder %v2416_v55, 384  ;;  %v837_v18 = vmax.f32 %v835_v35, %v2588_v9  ;;  %v1414_v23 = vadd.f32 %v1413_v34, %v1323_v2 }
 0x17c   : > { %v1324_v38 = vsel %vm1260_vm1, %v2719_v5, 0.0  ;;  %v2758_v24 = vsel %vm759_vm2, %v629_v46, -1e+30  ;;  %vm747_vm12 = vcmp.lt.s32.totalorder %v2525_v43, 384  ;;  %v874_v53 = vmax.f32 %v872_v17, %v2605_v58 }
 0x17d   : > { %v1325_v29 = vsel %vm1261_vm0, %v2727_v36, 0.0  ;;  %v853_v34 = vmax.f32 %v2734_v30, %v852_v25  ;;  %v700_v8 = vadd.s32 240, %v2248_v37  ;;  %v838_v35 = vmax.f32 %v836_v62, %v2644_v61 }
 0x17e   : > { %v875_v46 = vmax.f32 %v873_v13, %v2648_v48  ;;  %v839_v27 = vmax.f32 %v837_v18, %v2689_v22  ;;  %v559_v2 = vpop.f32.mrb[20].mxu0  ;;  %v889_v17 = vmax.f32 %v2730_v49, %v2748_v0  ;;  %vm1267_vm1 = vcmp.eq.s32.totalorder %v2525_v43, %v2301_v60  ;;  %v639_v40 = vpop.f32.mrb[20].mxu1 }
 0x17f   : > { %v876_v25 = vmax.f32 %v874_v53, %v2707_v16  ;;  %v1378_v58 = vadd.f32 %v1377_v21, %v1324_v38  ;;  %v2781_v62 = vsel %vm745_vm3, %v559_v2, -1e+30  ;;  %v561_v13 = vpop.f32.mrb[21].mxu0  ;;  %v2784_v18 = vmax.f32 %v853_v34, %v2758_v24  ;;  %v641_v49 = vpop.f32.mrb[21].mxu1 }
 0x180   : > { %3612 = vst [vmem:[#allocation41_spill] sm:$0xff] %v2781_v62  ;;  %vm1268_vm8 = vcmp.eq.s32.totalorder %v2551_v11, %v2290_v56  ;;  %v840_v22 = vmax.f32 %v838_v35, %v2719_v5  ;;  %v1415_v48 = vadd.f32 %v1414_v23, %v1325_v29  ;;  %v1326_v21 = vsel %vm1262_vm4, %v2781_v62, 0.0  ;;  %v563_v53 = vpop.f32.mrb[22].mxu0  ;;  %v643_v34 = vpop.f32.mrb[22].mxu1 }
 0x181   : > { %v2795_v38 = vsel %vm745_vm3, %v561_v13, -1e+30  ;;  %vm1269_vm0 = vcmp.eq.s32.totalorder %v2551_v11, %v2301_v60  ;;  %v877_v2 = vmax.f32 %v875_v46, %v2727_v36  ;;  %v1379_v16 = vadd.f32 %v1378_v58, %v1326_v21  ;;  %v565_v35 = vpop.f32.mrb[23].mxu0  ;;  %v645_v13 = vpop.f32.mrb[23].mxu1 }
 0x182   : > { %3613 = vst [vmem:[#allocation42_spill] sm:$0xff] %v2795_v38  ;;  %v1327_v23 = vsel %vm1263_vm5, %v2795_v38, 0.0  ;;  %v2806_v29 = vsel %vm746_vm6, %v563_v53, -1e+30  ;;  %v2815_v58 = vsel %vm746_vm6, %v565_v35, -1e+30  ;;  %v878_v47 = vmax.f32 %v876_v25, %v2795_v38 }
 0x183   : > { %3614 = vst [vmem:[#allocation43_spill] sm:$0xff] %v2806_v29  ;;  %v1416_v61 = vadd.f32 %v1415_v48, %v1327_v23  ;;  %v842_v9 = vmax.f32 %v840_v22, %v2806_v29  ;;  %v1328_v46 = vsel %vm1264_vm11, %v2806_v29, 0.0  ;;  %3615 = vst [vmem:[#allocation44_spill] sm:$0xff] %v2815_v58  ;;  %v879_v21 = vmax.f32 %v877_v2, %v2815_v58 }
 0x184   : > { %v1380_v41 = vadd.f32 %v1379_v16, %v1328_v46  ;;  %v1329_v53 = vsel %vm1265_vm13, %v2815_v58, 0.0  ;;  %v2825_v48 = vsel %vm759_vm2, %v2697_v7, -1e+30  ;;  %v2829_v23 = vsel %vm761_vm9, %v641_v49, -1e+30 }
 0x185   : > { %v1417_v22 = vadd.f32 %v1416_v61, %v1329_v53  ;;  %3616 = vst [vmem:[#allocation45_spill] sm:$0xff] %v2829_v23  ;;  %v2833_v16 = vsel %vm762_vm10, %v643_v34, -1e+30  ;;  %v2837_v2 = vsel %vm762_vm10, %v645_v13, -1e+30  ;;  %v2848_v61 = vsel %vm1295_vm15, %v2829_v23, 0.0 }
 0x186   : > { %3617 = vst [vmem:[#allocation46_spill] sm:$0xff] %v2833_v16  ;;  %3618 = vst [vmem:[#allocation47_spill] sm:$0xff] %v2837_v2  ;;  %v2842_v3 = vsel %vm760_vm14, %v2711_v57, -1e+30  ;;  %v2854_v7 = vsel %vm1296_vm7, %v2833_v16, 0.0  ;;  %vm3619_vm2 = vcmp.eq.s32.totalorder %v2510_v28, %v2301_v60  ;;  %v841_v57 = vmax.f32 %v839_v27, %v2781_v62  ;;  %v569_v34 = vpop.f32.mrb[24].mxu0 }
 0x187   : > { %v2860_v49 = vsel %vm3619_vm2, %v2837_v2, 0.0  ;;  %v2866_v35 = vsel %vm760_vm14, %v2722_v51, -1e+30  ;;  %v2868_v13 = vpop.f32.mrb[24].mxu1  ;;  %v2871_v46 = vadd.s32 %v2252_v39, %v700_v8  ;;  %v701_v53 = vadd.s32 248, %v2248_v37  ;;  %v571_v45 = vpop.f32.mrb[25].mxu0 }
 0x188   : > { %v890_v28 = vmax.f32 %v2825_v48, %v889_v17  ;;  %v2878_v27 = vsel %vm747_vm12, %v569_v34, -1e+30  ;;  %v2882_v51 = vsel %vm761_vm9, %v639_v40, -1e+30  ;;  %v2884_v4 = vpop.f32.mrb[25].mxu1  ;;  %v857_v8 = vmax.f32 %v2784_v18, %v2842_v3  ;;  %v573_v34 = vpop.f32.mrb[26].mxu0 }
 0x189   : > { %3620 = vst [vmem:[#allocation48_spill] sm:$0xff] %v2878_v27  ;;  %v843_v58 = vmax.f32 %v841_v57, %v2878_v27  ;;  %vm3621_vm3 = vcmp.eq.s32.totalorder %v2525_v43, %v2290_v56  ;;  %v2895_v25 = vsel %vm747_vm12, %v571_v45, -1e+30  ;;  %v2897_v29 = vpop.f32.mrb[26].mxu1  ;;  %vm1274_vm4 = vcmp.eq.s32.totalorder %v2276_v50, %v2290_v56 }
 0x18a   : > { %v1330_v17 = vsel %vm3621_vm3, %v2878_v27, 0.0  ;;  %3622 = vst [vmem:[#allocation49_spill] sm:$0xff] %v2895_v25  ;;  %vm1275_vm5 = vcmp.eq.s32.totalorder %v2276_v50, %v2301_v60  ;;  %v880_v18 = vmax.f32 %v878_v47, %v2895_v25  ;;  %v1331_v57 = vsel %vm1267_vm1, %v2895_v25, 0.0  ;;  %v575_v27 = vpop.f32.mrb[27].mxu0  ;;  %v2912_v38 = vpop.f32.mrb[27].mxu1 }
 0x18b   : > { %v1381_v40 = vadd.f32 %v1380_v41, %v1330_v17  ;;  %vm3623_vm6 = vcmp.lt.s32.totalorder %v2551_v11, 384  ;;  %vm1276_vm11 = vcmp.eq.s32.totalorder %v2284_v54, %v2290_v56  ;;  %v1418_v62 = vadd.f32 %v1417_v22, %v1331_v57 }
 0x18c   : > { %v2910_v45 = vsel %vm3623_vm6, %v573_v34, -1e+30  ;;  %vm3624_vm13 = vmmov %vm3623_vm6  ;;  %v892_v17 = vmax.f32 %v890_v28, %v2866_v35  ;;  %vm1277_vm10 = vcmp.eq.s32.totalorder %v2284_v54, %v2301_v60  ;;  %v859_v57 = vmax.f32 %v857_v8, %v2882_v51 }
 0x18d   : > { %v2917_v41 = vmax.f32 %v842_v9, %v2910_v45  ;;  %v1332_v43 = vsel %vm1268_vm8, %v2910_v45, 0.0  ;;  %v2925_v47 = vsel %vm3624_vm13, %v575_v27, -1e+30  ;;  %vm749_vm14 = vcmp.lt.s32.totalorder %v2596_v15, 384 }
 0x18e   : > { %3625 = vst [vmem:[#allocation50_spill] sm:$0xff] %v2925_v47  ;;  %v1382_v34 = vadd.f32 %v1381_v40, %v1332_v43  ;;  %v881_v25 = vmax.f32 %v879_v21, %v2925_v47  ;;  %v1333_v9 = vsel %vm1269_vm0, %v2925_v47, 0.0  ;;  %vm1270_vm15 = vcmp.eq.s32.totalorder %v2596_v15, %v2290_v56  ;;  %v579_v11 = vpop.f32.mrb[28].mxu0 }
 0x18f   : > { %v1419_v22 = vadd.f32 %v1418_v62, %v1333_v9  ;;  %vm1271_vm7 = vcmp.eq.s32.totalorder %v2596_v15, %v2301_v60  ;;  %v2942_v21 = vadd.s32 %v2252_v39, %v701_v53  ;;  %vm1278_vm12 = vcmp.eq.s32.totalorder %v2314_v1, %v2290_v56  ;;  %v659_v62 = vpop.f32.mrb[28].mxu1  ;;  %v581_v28 = vpop.f32.mrb[29].mxu0 }
 0x190   : > { %v894_v27 = vmax.f32 %v892_v17, %v881_v25  ;;  %vm750_vm8 = vcmp.lt.s32.totalorder %v2621_v10, 384  ;;  %vm1272_vm1 = vcmp.eq.s32.totalorder %v2621_v10, %v2290_v56  ;;  %vm763_vm0 = vcmp.lt.s32.totalorder %v2624_v59, 384  ;;  %v661_v8 = vpop.f32.mrb[29].mxu1  ;;  %v583_v9 = vpop.f32.mrb[30].mxu0 }
 0x191   : > { %vm764_vm2 = vcmp.lt.s32.totalorder %v2636_v52, 384  ;;  %v2956_v53 = vsel %vm749_vm14, %v579_v11, -1e+30  ;;  %vm1273_vm3 = vcmp.eq.s32.totalorder %v2621_v10, %v2301_v60  ;;  %vm765_vm6 = vcmp.lt.s32.totalorder %v2871_v46, 384  ;;  %v3630_v10 = vld [vmem:[#allocation19_spill] sm:$0xff] }
 0x192   : > { %v896_v39 = vmax.f32 %v894_v27, %v2829_v23  ;;  %vm1280_vm13 = vcmp.eq.s32.totalorder %v2329_v6, %v2290_v56  ;;  %v854_v25 = vmax.f32 %v2833_v16, %v859_v57  ;;  %v845_v40 = vmax.f32 %v843_v58, %v2956_v53  ;;  %v663_v27 = vpop.f32.mrb[30].mxu1  ;;  %v585_v57 = vpop.f32.mrb[31].mxu0 }
 0x193   : > { %v1334_v43 = vsel %vm1270_vm15, %v2956_v53, 0.0  ;;  %v2973_v17 = vsel %vm749_vm14, %v581_v28, -1e+30  ;;  %vm766_vm9 = vcmp.lt.s32.totalorder %v2942_v21, 384  ;;  %v665_v16 = vpop.f32.mrb[31].mxu1  ;;  %vm1282_vm14 = vcmp.eq.s32.totalorder %v2352_v20, %v2290_v56 }
 0x194   : > { %3626 = vst [vmem:[#allocation51_spill] sm:$0xff] %v2973_v17  ;;  %v1383_v11 = vadd.f32 %v1382_v34, %v1334_v43  ;;  %v891_v23 = vmax.f32 %v2837_v2, %v896_v39  ;;  %v882_v47 = vmax.f32 %v880_v18, %v2973_v17  ;;  %v1335_v58 = vsel %vm1271_vm7, %v2973_v17, 0.0 }
 0x195   : > { %vm1283_vm15 = vcmp.eq.s32.totalorder %v2352_v20, %v2301_v60  ;;  %v856_v34 = vmax.f32 %v854_v25, %v845_v40  ;;  %v1420_v28 = vadd.f32 %v1419_v22, %v1335_v58  ;;  %v2988_v18 = vsel %vm750_vm8, %v583_v9, -1e+30  ;;  %v3628_v25 = vld [vmem:[#allocation18_spill] sm:$0xff] }
 0x196   : > { %3627 = vst [vmem:[#allocation52_spill] sm:$0xff] %v2988_v18  ;;  %v2992_v15 = vsel %vm750_vm8, %v585_v57, -1e+30  ;;  %v893_v39 = vmax.f32 %v891_v23, %v882_v47  ;;  %v846_v43 = vmax.f32 %v2917_v41, %v2988_v18  ;;  %v1336_v2 = vsel %vm1272_vm1, %v2988_v18, 0.0  ;;  %v3629_v9 = vld [vmem:[#allocation22_spill] sm:$0xff]  ;;  %v3631_v57 = vld [vmem:[#allocation23_spill] sm:$0xff] }
 0x197   : > { %v1337_v22 = vsel %vm1273_vm3, %v2992_v15, 0.0  ;;  %v1338_v40 = vsel %vm1274_vm4, %v3628_v25, 0.0  ;;  %v1339_v23 = vsel %vm1275_vm5, %v3629_v9, 0.0  ;;  %vm1284_vm7 = vcmp.eq.s32.totalorder %v2366_v26, %v2290_v56 }
 0x198   : > { %vm1285_vm8 = vcmp.eq.s32.totalorder %v2366_v26, %v2301_v60  ;;  %v1384_v41 = vadd.f32 %v1383_v11, %v1336_v2  ;;  %v1421_v47 = vadd.f32 %v1420_v28, %v1337_v22  ;;  %v1340_v58 = vsel %vm1276_vm11, %v3630_v10, 0.0 }
 0x199   : > { %v1341_v25 = vsel %vm1277_vm10, %v3631_v57, 0.0  ;;  %v858_v50 = vmax.f32 %v856_v34, %v846_v43  ;;  %v895_v9 = vmax.f32 %v893_v39, %v2992_v15  ;;  %vm1286_vm4 = vcmp.eq.s32.totalorder %v2378_v31, %v2290_v56 }
 0x19a   : > { %v1385_v18 = vadd.f32 %v1384_v41, %v1338_v40  ;;  %v1422_v17 = vadd.f32 %v1421_v47, %v1339_v23  ;;  %v3030_v2 = vsel %vm763_vm0, %v2868_v13, -1e+30  ;;  %v3035_v11 = vsel %vm763_vm0, %v2884_v4, -1e+30  ;;  %v3638_v40 = vld [vmem:[#allocation24_spill] sm:$0xff] }
 0x19b   : > { %3632 = vst [vmem:[#allocation19_spill] sm:$0xff] %v3030_v2  ;;  %3633 = vst [vmem:[#allocation23_spill] sm:$0xff] %v3035_v11  ;;  %v860_v54 = vmax.f32 %v858_v50, %v3030_v2  ;;  %v897_v34 = vmax.f32 %v895_v9, %v3035_v11  ;;  %v3042_v28 = vsel %vm764_vm2, %v2897_v29, -1e+30  ;;  %v3047_v39 = vsel %vm764_vm2, %v2912_v38, -1e+30 }
 0x19c   : > { %3634 = vst [vmem:[#allocation53_spill] sm:$0xff] %v3042_v28  ;;  %3635 = vst [vmem:[#allocation54_spill] sm:$0xff] %v3047_v39  ;;  %v1386_v13 = vadd.f32 %v1385_v18, %v1340_v58  ;;  %v1423_v43 = vadd.f32 %v1422_v17, %v1341_v25  ;;  %v3051_v4 = vsel %vm765_vm6, %v659_v62, -1e+30  ;;  %v3055_v22 = vsel %vm765_vm6, %v661_v8, -1e+30 }
 0x19d   : > { %3636 = vst [vmem:[#allocation55_spill] sm:$0xff] %v3051_v4  ;;  %3637 = vst [vmem:[#allocation56_spill] sm:$0xff] %v3055_v22  ;;  %v1342_v29 = vsel %vm1278_vm12, %v3638_v40, 0.0  ;;  %v3639_v9 = vld [vmem:[#allocation28_spill] sm:$0xff]  ;;  %vm3640_vm5 = vcmp.eq.s32.totalorder %v2314_v1, %v2301_v60  ;;  %v861_v17 = vmax.f32 %v3042_v28, %v860_v54  ;;  %v898_v18 = vmax.f32 %v3047_v39, %v897_v34  ;;  %v3641_v25 = vld [vmem:[#allocation30_spill] sm:$0xff] }
 0x19e   : > { %v1343_v38 = vsel %vm3640_vm5, %v3639_v9, 0.0  ;;  %vm1287_vm11 = vcmp.eq.s32.totalorder %v2378_v31, %v2301_v60  ;;  %v1387_v62 = vadd.f32 %v1386_v13, %v1342_v29  ;;  %v1344_v23 = vsel %vm1280_vm13, %v3641_v25, 0.0  ;;  %v3642_v41 = vld [vmem:[#allocation32_spill] sm:$0xff] }
 0x19f   : > { %v1424_v8 = vadd.f32 %v1423_v43, %v1343_v38  ;;  %vm3643_vm10 = vcmp.eq.s32.totalorder %v2329_v6, %v2301_v60  ;;  %v862_v47 = vmax.f32 %v3051_v4, %v861_v17  ;;  %v899_v58 = vmax.f32 %v3055_v22, %v898_v18  ;;  %v3646_v43 = vld [vmem:[#allocation35_spill] sm:$0xff] }
 0x1a0   : > { %v1345_v1 = vsel %vm3643_vm10, %v3642_v41, 0.0  ;;  %v1388_v50 = vadd.f32 %v1387_v62, %v1344_v23  ;;  %v3081_v34 = vsel %vm766_vm9, %v663_v27, -1e+30  ;;  %v3085_v13 = vsel %vm766_vm9, %v665_v16, -1e+30 }
 0x1a1   : > { %v1425_v54 = vadd.f32 %v1424_v8, %v1345_v1  ;;  %3644 = vst [vmem:[#allocation24_spill] sm:$0xff] %v3081_v34  ;;  %3645 = vst [vmem:[#allocation28_spill] sm:$0xff] %v3085_v13  ;;  %v1346_v6 = vsel %vm1282_vm14, %v3646_v43, 0.0  ;;  %v1347_v29 = vsel %vm1283_vm15, %v2613_v14, 0.0  ;;  %v863_v38 = vmax.f32 %v3081_v34, %v862_v47 }
 0x1a2   : > { %v900_v17 = vmax.f32 %v3085_v13, %v899_v58  ;;  %vm1288_vm12 = vcmp.eq.s32.totalorder %v2381_v32, %v2290_v56  ;;  %vm1289_vm9 = vcmp.eq.s32.totalorder %v2381_v32, %v2301_v60  ;;  %v1389_v16 = vadd.f32 %v1388_v50, %v1346_v6 }
 0x1a3   : > { %v1426_v27 = vadd.f32 %v1425_v54, %v1347_v29  ;;  %v1348_v18 = vsel %vm1284_vm7, %v2656_v12, 0.0  ;;  %v1349_v20 = vsel %vm1285_vm8, %v2666_v63, 0.0  ;;  %v864_v62 = vrot.slane %v863_v38, 4 }
 0x1a4   : > { %v901_v8 = vrot.slane %v900_v17, 4  ;;  %vm1290_vm1 = vcmp.eq.s32.totalorder %v2384_v33, %v2290_v56  ;;  %v1390_v23 = vadd.f32 %v1389_v16, %v1348_v18  ;;  %v2052_v47 = vmov 1966171168  }
 0x1a5   : > { %v1427_v1 = vadd.f32 %v1426_v27, %v1349_v20  ;;  %v911_v58 = vunpack.c.l.s4 %v2052_v47  ;;  %v1350_v50 = vsel %vm1286_vm4, %v2680_v19, 0.0  ;;  %v1351_v26 = vsel %vm1287_vm11, %v2693_v44, 0.0 }
 0x1a6   : > { %v865_v54 = vmax.f32 %v863_v38, %v864_v62  ;;  %v902_v6 = vmax.f32 %v900_v17, %v901_v8  ;;  %vm1291_vm0 = vcmp.eq.s32.totalorder %v2384_v33, %v2301_v60  ;;  %vm1292_vm2 = vcmp.eq.s32.totalorder %v2401_v42, %v2290_v56 }
 0x1a7   : > { %v1391_v29 = vadd.f32 %v1390_v23, %v1350_v50  ;;  %v1428_v16 = vadd.f32 %v1427_v1, %v1351_v26  ;;  %v1352_v27 = vsel %vm1288_vm12, %v2734_v30, 0.0  ;;  %v1353_v31 = vsel %vm1289_vm9, %v2748_v0, 0.0 }
 0x1a8   : > { %v866_v38 = vrot.slane %v865_v54, 2  ;;  %v903_v17 = vrot.slane %v902_v6, 2  ;;  %vm1293_vm3 = vcmp.eq.s32.totalorder %v2401_v42, %v2301_v60  ;;  %v912_v62 = vunpack.c.0.s8 %v911_v58 }
 0x1a9   : > { %v1392_v18 = vadd.f32 %v1391_v29, %v1352_v27  ;;  %v1429_v20 = vadd.f32 %v1428_v16, %v1353_v31  ;;  %v1354_v8 = vsel %vm1290_vm1, %v2758_v24, 0.0  ;;  %v1355_v23 = vsel %vm1291_vm0, %v2825_v48, 0.0 }
 0x1aa   : > { %v867_v1 = vmax.f32 %v865_v54, %v866_v38  ;;  %v904_v47 = vmax.f32 %v902_v6, %v903_v17  ;;  %vm1294_vm6 = vcmp.eq.s32.totalorder %v2416_v55, %v2290_v56  ;;  %v1356_v26 = vsel %vm1292_vm2, %v2842_v3, 0.0 }
 0x1ab   : > { %v1393_v32 = vadd.f32 %v1392_v18, %v1354_v8  ;;  %v1430_v50 = vadd.f32 %v1429_v20, %v1355_v23  ;;  %v1357_v58 = vsel %vm1293_vm3, %v2866_v35, 0.0  ;;  %v1358_v31 = vsel %vm1294_vm6, %v2882_v51, 0.0 }
 0x1ac   : > { %v868_v29 = vrot.slane %v867_v1, 1  ;;  %v905_v16 = vrot.slane %v904_v47, 1  ;;  %v3147_v38 = vsub.s32 %v912_v62, %v2248_v37  ;;  %vm1298_vm13 = vcmp.eq.s32.totalorder %v2624_v59, %v2290_v56 }
 0x1ad   : > { %v1394_v33 = vadd.f32 %v1393_v32, %v1356_v26  ;;  %v1431_v27 = vadd.f32 %v1430_v50, %v1357_v58  ;;  %vm1299_vm14 = vcmp.eq.s32.totalorder %v2624_v59, %v2301_v60  ;;  %vm1300_vm15 = vcmp.eq.s32.totalorder %v2636_v52, %v2290_v56 }
 0x1ae   : > { %v869_v54 = vmax.f32 %v867_v1, %v868_v29  ;;  %v906_v6 = vmax.f32 %v904_v47, %v905_v16  ;;  %vm1301_vm7 = vcmp.eq.s32.totalorder %v2636_v52, %v2301_v60  ;;  %v1362_v62 = vsel %vm1298_vm13, %v3030_v2, 0.0 }
 0x1af   : > { %v1395_v55 = vadd.f32 %v1394_v33, %v1358_v31  ;;  %v1432_v42 = vadd.f32 %v1431_v27, %v2848_v61  ;;  %v1363_v8 = vsel %vm1299_vm14, %v3035_v11, 0.0  ;;  %vm1302_vm8 = vcmp.eq.s32.totalorder %v2871_v46, %v2290_v56  ;;  %v3167_v61 = vld [vmem:[#allocation2] sm:$0x3]  ;;  %v3663_v27 = vld [vmem:[#allocation15_spill] sm:$0xff] }
 0x1b0   : > { %v909_v17 = vcombine.low %v869_v54, %v906_v6  ;;  %vm1303_vm4 = vcmp.eq.s32.totalorder %v2871_v46, %v2301_v60  ;;  %3647 = vst [vmem:[#allocation30_spill] sm:$0xff] %v3167_v61  ;;  %v1365_v52 = vsel %vm1301_vm7, %v3047_v39, 0.0  ;;  %vm1304_vm5 = vcmp.eq.s32.totalorder %v2942_v21, %v2290_v56 }
 0x1b1   : > { %v1396_v18 = vadd.f32 %v1395_v55, %v2854_v7  ;;  %v1433_v20 = vadd.f32 %v1432_v42, %v2860_v49  ;;  %v1364_v7 = vsel %vm1300_vm15, %v3042_v28, 0.0  ;;  %v3648_v50 = vlaneseq }
 0x1b2   : > { %v916_v23 = vrot.slane %v909_v17, %v3147_v38  ;;  %vm1305_vm10 = vcmp.eq.s32.totalorder %v2942_v21, %v2301_v60  ;;  %v1366_v46 = vsel %vm1302_vm8, %v3051_v4, 0.0  ;;  %v1367_v58 = vsel %vm1303_vm4, %v3055_v22, 0.0  ;;  %v3672_v22 = vld [vmem:[#allocation25_spill] sm:$0xff] }
 0x1b3   : > { %v1397_v59 = vadd.f32 %v1396_v18, %v1362_v62  ;;  %v1434_v1 = vadd.f32 %v1433_v20, %v1363_v8  ;;  %vm3175_vm11 = vcmp.lt.s32.totalorder %v3648_v50, 256  ;;  %v1368_v33 = vsel %vm1304_vm5, %v3081_v34, 0.0  ;;  %v3654_v20 = vld [vmem:[#allocation41_spill] sm:$0xff]  ;;  %v3655_v8 = vld [vmem:[#allocation42_spill] sm:$0xff]  ;;  %v3664_v50 = vld [vmem:[#allocation20_spill] sm:$0xff] }
 0x1b4   : > { %v923_v49 = vrot.slane %v916_v23, %v3147_v38  ;;  %v1369_v60 = vsel %vm1305_vm10, %v3085_v13, 0.0  ;;  %v3652_v54 = vsub.s32 0, %v2248_v37  ;;  %v3653_v55 = vsub.s32 1, %v2248_v37  ;;  %v3657_v37 = vld [vmem:[#allocation44_spill] sm:$0xff] }
 0x1b5   : > { %v1398_v47 = vadd.f32 %v1397_v59, %v1364_v7  ;;  %v1435_v32 = vadd.f32 %v1434_v1, %v1365_v52  ;;  %v3656_v59 = vld [vmem:[#allocation43_spill] sm:$0xff]  ;;  %v3658_v52 = vld [vmem:[#allocation48_spill] sm:$0xff]  ;;  %v3671_v1 = vld [vmem:[#allocation21_spill] sm:$0xff] }
 0x1b6   : > { %v3184_v29 = vmax.f32 %v3167_v61, %v923_v49 }
 0x1b7   : > { %v1399_v56 = vadd.f32 %v1398_v47, %v1366_v46  ;;  %v1436_v16 = vadd.f32 %v1435_v32, %v1367_v58  ;;  %v3659_v47 = vld [vmem:[#allocation49_spill] sm:$0xff]  ;;  %v3660_v46 = vld [vmem:[#allocation50_spill] sm:$0xff] }
 0x1b8   : > { %3651 = vst [vmem:[#allocation32_spill] sm:$0xff] %v3184_v29  ;;  %1232 = vst.msk [vmem:[#allocation2] sm:$0x3] %vm3175_vm11, %v3184_v29  ;;  %v3198_v6 = vrot.slane %v3184_v29, %v3652_v54  ;;  %v3203_v42 = vrot.slane %v3184_v29, %v3653_v55  ;;  %v3665_v58 = vld [vmem:[#allocation14_spill] sm:$0xff]  ;;  %v3669_v55 = vld [vmem:[#allocation16_spill] sm:$0xff] }
 0x1b9   : > { %v1400_v21 = vadd.f32 %v1399_v56, %v1368_v33  ;;  %v3193_v31 = vadd.f32 %v1436_v16, %v1369_v60  ;;  %v3661_v16 = vld [vmem:[#allocation51_spill] sm:$0xff]  ;;  %v3662_v60 = vld [vmem:[#allocation52_spill] sm:$0xff]  ;;  %v3666_v56 = vld [vmem:[#allocation45_spill] sm:$0xff] }
 0x1ba   : > { %v942_v32 = vsub.f32 %v3663_v27, %v3198_v6  ;;  %v943_v49 = vsub.f32 %v3664_v50, %v3203_v42  ;;  %v944_v7 = vsub.f32 %v3665_v58, %v3198_v6  ;;  %v945_v18 = vsub.f32 %v3669_v55, %v3203_v42  ;;  %v3670_v58 = vld [vmem:[#allocation17_spill] sm:$0xff]  ;;  %v3673_v55 = vld [vmem:[#allocation26_spill] sm:$0xff] }
 0x1bb   : > { %v1401_v29 = vrot.slane %v1400_v21, 4  ;;  %v946_v61 = vsub.f32 %v3670_v58, %v3198_v6  ;;  %v947_v4 = vsub.f32 %v3671_v1, %v3203_v42  ;;  %v948_v62 = vsub.f32 %v3672_v22, %v3198_v6 }
 0x1bc   : > { %v1006_v17 = vmul.f32 1.442695, %v942_v32  ;;  %v1008_v50 = vmul.f32 1.442695, %v943_v49  ;;  %v1010_v39 = vmul.f32 1.442695, %v944_v7  ;;  %v949_v34 = vsub.f32 %v3673_v55, %v3203_v42 }
 0x1bd   : > { %v1012_v23 = vmul.f32 1.442695, %v945_v18  ;;  %v1402_v27 = vadd.f32 %v1401_v29, %v1400_v21  ;;  %v3674_v49 = vld [vmem:[#allocation27_spill] sm:$0xff]  ;;  %v1014_v13 = vmul.f32 1.442695, %v946_v61  ;;  %v3675_v7 = vld [vmem:[#allocation29_spill] sm:$0xff] }
 0x1be   : > { %1767 = vpow2.f32 %v1006_v17  ;;  %v950_v32 = vsub.f32 %v3674_v49, %v3198_v6  ;;  %v951_v58 = vsub.f32 %v3675_v7, %v3203_v42  ;;  %v1016_v1 = vmul.f32 1.442695, %v947_v4  ;;  %v3676_v18 = vld [vmem:[#allocation31_spill] sm:$0xff]  ;;  %v3677_v17 = vld [vmem:[#allocation33_spill] sm:$0xff]  ;;  %v3678_v29 = vld [vmem:[#allocation34_spill] sm:$0xff] }
 0x1bf   : > { %1769 = vpow2.f32 %v1008_v50  ;;  %v952_v28 = vsub.f32 %v3676_v18, %v3198_v6  ;;  %v1018_v22 = vmul.f32 1.442695, %v948_v62  ;;  %v953_v11 = vsub.f32 %v3677_v17, %v3203_v42  ;;  %v3679_v61 = vld [vmem:[#allocation36_spill] sm:$0xff]  ;;  %v3680_v4 = vld [vmem:[#allocation37_spill] sm:$0xff]  ;;  %v3681_v18 = vld [vmem:[#allocation38_spill] sm:$0xff] }
 0x1c0   : > { %1771 = vpow2.f32 %v1010_v39  ;;  %v1020_v55 = vmul.f32 1.442695, %v949_v34  ;;  %v1403_v50 = vrot.slane %v1402_v27, 2  ;;  %v954_v21 = vsub.f32 %v3678_v29, %v3198_v6 }
 0x1c1   : > { %1773 = vpow2.f32 %v1012_v23  ;;  %v1022_v39 = vmul.f32 1.442695, %v950_v32  ;;  %v955_v49 = vsub.f32 %v3679_v61, %v3203_v42  ;;  %v1024_v23 = vmul.f32 1.442695, %v951_v58  ;;  %v3683_v58 = vld [vmem:[#allocation40_spill] sm:$0xff] }
 0x1c2   : > { %1775 = vpow2.f32 %v1014_v13  ;;  %v956_v7 = vsub.f32 %v3680_v4, %v3198_v6  ;;  %v1026_v62 = vmul.f32 1.442695, %v952_v28  ;;  %v957_v17 = vsub.f32 %v3681_v18, %v3203_v42  ;;  %v3682_v13 = vld [vmem:[#allocation39_spill] sm:$0xff] }
 0x1c3   : > { %1777 = vpow2.f32 %v1016_v1  ;;  %v1028_v34 = vmul.f32 1.442695, %v953_v11  ;;  %v1404_v54 = vadd.f32 %v1403_v50, %v1402_v27  ;;  %v958_v32 = vsub.f32 %v3682_v13, %v3198_v6  ;;  %v3684_v50 = vld [vmem:[#allocation18_spill] sm:$0xff] }
 0x1c4   : > { %1779 = vpow2.f32 %v1018_v22  ;;  %v1030_v29 = vmul.f32 1.442695, %v954_v21  ;;  %v959_v1 = vsub.f32 %v3683_v58, %v3203_v42  ;;  %v1032_v4 = vmul.f32 1.442695, %v955_v49  ;;  %v3685_v21 = vld [vmem:[#allocation22_spill] sm:$0xff] }
 0x1c5   : > { %1781 = vpow2.f32 %v1020_v55  ;;  %v1034_v28 = vmul.f32 1.442695, %v956_v7  ;;  %v1036_v55 = vmul.f32 1.442695, %v957_v17  ;;  %v1405_v11 = vrot.slane %v1404_v54, 1 }
 0x1c6   : > { %1783 = vpow2.f32 %v1022_v39  ;;  %v1038_v27 = vmul.f32 1.442695, %v958_v32  ;;  %v974_v18 = vsub.f32 %v3684_v50, %v3198_v6  ;;  %v975_v39 = vsub.f32 %v3685_v21, %v3203_v42 }
 0x1c7   : > { %1785 = vpow2.f32 %v1024_v23  ;;  %v1040_v13 = vmul.f32 1.442695, %v959_v1  ;;  %v3686_v49 = vsub.f32 %v2719_v5, %v3198_v6  ;;  %v3687_v32 = vsub.f32 %v2727_v36, %v3203_v42 }
 0x1c8   : > { %v1768_v2 = vpop.eup %1767  ;;  %1787 = vpow2.f32 %v1026_v62 }
 0x1c9   : > { %v1770_v61 = vpop.eup %1769  ;;  %1789 = vpow2.f32 %v1028_v34  ;;  %v1042_v23 = vmul.f32 1.442695, %v3686_v49  ;;  %v976_v34 = vsub.f32 %v3630_v10, %v3198_v6  ;;  %v3700_v10 = vsub.f32 %v3638_v40, %v3198_v6 }
 0x1ca   : > { %v1772_v22 = vpop.eup %1771  ;;  %1791 = vpow2.f32 %v1030_v29  ;;  %v1044_v29 = vmul.f32 1.442695, %v3687_v32  ;;  %v986_v40 = vsub.f32 %v2680_v19, %v3198_v6 }
 0x1cb   : > { %v1774_v33 = vpop.eup %1773  ;;  %1793 = vpow2.f32 %v1032_v4  ;;  %v1134_v7 = vadd.f32 %v1772_v22, %v1768_v2  ;;  %v1438_v4 = vrot.slane %v3193_v31, 4  ;;  %v3689_v22 = vsub.f32 %v3655_v8, %v3203_v42 }
 0x1cc   : > { %v1776_v58 = vpop.eup %1775  ;;  %1795 = vpow2.f32 %v1034_v28  ;;  %v1171_v62 = vadd.f32 %v1774_v33, %v1770_v61  ;;  %v3688_v28 = vsub.f32 %v3654_v20, %v3198_v6  ;;  %v977_v61 = vsub.f32 %v3631_v57, %v3203_v42 }
 0x1cd   : > { %v1778_v17 = vpop.eup %1777  ;;  %1797 = vpow2.f32 %v1036_v55  ;;  %v1135_v49 = vadd.f32 %v1776_v58, %v1134_v7  ;;  %v1048_v36 = vmul.f32 1.442695, %v3689_v22  ;;  %v1439_v55 = vadd.f32 %v1438_v4, %v3193_v31 }
 0x1ce   : > { %v1780_v1 = vpop.eup %1779  ;;  %1799 = vpow2.f32 %v1038_v27  ;;  %v1046_v5 = vmul.f32 1.442695, %v3688_v28  ;;  %v1172_v2 = vadd.f32 %v1778_v17, %v1171_v62  ;;  %v3690_v27 = vsub.f32 %v3656_v59, %v3198_v6 }
 0x1cf   : > { %v1782_v33 = vpop.eup %1781  ;;  %1801 = vpow2.f32 %v1040_v13  ;;  %v1136_v28 = vadd.f32 %v1780_v1, %v1135_v49  ;;  %v3691_v13 = vsub.f32 %v3657_v37, %v3203_v42  ;;  %v1440_v17 = vrot.slane %v1439_v55, 2 }
 0x1d0   : > { %v1784_v32 = vpop.eup %1783  ;;  %1803 = vpow2.f32 %v1042_v23  ;;  %v1050_v20 = vmul.f32 1.442695, %v3690_v27  ;;  %v1173_v58 = vadd.f32 %v1782_v33, %v1172_v2  ;;  %v3692_v31 = vsub.f32 %v3658_v52, %v3198_v6 }
 0x1d1   : > { %v1786_v7 = vpop.eup %1785  ;;  %1805 = vpow2.f32 %v1044_v29  ;;  %v1052_v8 = vmul.f32 1.442695, %v3691_v13  ;;  %v1137_v59 = vadd.f32 %v1784_v32, %v1136_v28  ;;  %v1406_v49 = vadd.f32 %v1405_v11, %v1404_v54 }
 0x1d2   : > { %v1788_v22 = vpop.eup %1787  ;;  %1807 = vpow2.f32 %v1046_v5  ;;  %v1054_v23 = vmul.f32 1.442695, %v3692_v31  ;;  %v1174_v4 = vadd.f32 %v1786_v7, %v1173_v58  ;;  %v3693_v2 = vsub.f32 %v3659_v47, %v3203_v42 }
 0x1d3   : > { %v1790_v1 = vpop.eup %1789  ;;  %1809 = vpow2.f32 %v1048_v36  ;;  %v1441_v33 = vadd.f32 %v1440_v17, %v1439_v55  ;;  %v3694_v37 = vsub.f32 %v2910_v45, %v3198_v6  ;;  %v1138_v13 = vadd.f32 %v1788_v22, %v1137_v59 }
 0x1d4   : > { %v1056_v29 = vmul.f32 1.442695, %v3693_v2  ;;  %v1792_v27 = vpop.eup %1791  ;;  %1811 = vpow2.f32 %v1050_v20  ;;  %v1175_v62 = vadd.f32 %v1790_v1, %v1174_v4  ;;  %v979_v32 = vsub.f32 %v3639_v9, %v3203_v42 }
 0x1d5   : > { %v1058_v5 = vmul.f32 1.442695, %v3694_v37  ;;  %v1794_v52 = vpop.eup %1793  ;;  %1813 = vpow2.f32 %v1052_v8  ;;  %v3695_v54 = vsub.f32 %v3660_v46, %v3203_v42  ;;  %v1442_v47 = vrot.slane %v1441_v33, 1 }
 0x1d6   : > { %v1796_v36 = vpop.eup %1795  ;;  %1815 = vpow2.f32 %v1054_v23  ;;  %v3696_v55 = vsub.f32 %v2956_v53, %v3198_v6  ;;  %v1139_v45 = vadd.f32 %v1792_v27, %v1138_v13  ;;  %v1176_v28 = vadd.f32 %v1794_v52, %v1175_v62 }
 0x1d7   : > { %v1060_v11 = vmul.f32 1.442695, %v3695_v54  ;;  %v1798_v58 = vpop.eup %1797  ;;  %v980_v7 = vsub.f32 %v3641_v25, %v3198_v6  ;;  %1817 = vpow2.f32 %v1056_v29  ;;  %v3697_v9 = vsub.f32 %v3661_v16, %v3203_v42 }
 0x1d8   : > { %v1062_v20 = vmul.f32 1.442695, %v3696_v55  ;;  %v1443_v46 = vadd.f32 %v1442_v47, %v1441_v33  ;;  %v1800_v17 = vpop.eup %1799  ;;  %1819 = vpow2.f32 %v1058_v5  ;;  %v3698_v22 = vsub.f32 %v3662_v60, %v3198_v6  ;;  %v1233_v5 = vld [vmem:[#allocation9] sm:$0x3] }
 0x1d9   : > { %v1064_v8 = vmul.f32 1.442695, %v3697_v9  ;;  %v1140_v53 = vadd.f32 %v1796_v36, %v1139_v45  ;;  %v1177_v23 = vadd.f32 %v1798_v58, %v1176_v28  ;;  %v1802_v59 = vpop.eup %1801  ;;  %v981_v62 = vsub.f32 %v3642_v41, %v3203_v42 }
 0x1da   : > { %v1066_v31 = vmul.f32 1.442695, %v3698_v22  ;;  %1821 = vpow2.f32 %v1060_v11  ;;  %v3699_v25 = vsub.f32 %v2992_v15, %v3203_v42  ;;  %v1446_v16 = vcombine.low %v1406_v49, %v1443_v46  ;;  %v1804_v1 = vpop.eup %1803 }
 0x1db   : > { %1823 = vpow2.f32 %v1062_v20  ;;  %v1070_v2 = vmul.f32 1.442695, %v974_v18  ;;  %v1141_v60 = vadd.f32 %v1800_v17, %v1140_v53  ;;  %v1178_v29 = vadd.f32 %v1802_v59, %v1177_v23  ;;  %v1806_v33 = vpop.eup %1805 }
 0x1dc   : > { %v1068_v4 = vmul.f32 1.442695, %v3699_v25  ;;  %v982_v27 = vsub.f32 %v3646_v43, %v3198_v6  ;;  %1825 = vpow2.f32 %v1064_v8  ;;  %v1072_v41 = vmul.f32 1.442695, %v975_v39  ;;  %v1808_v49 = vpop.eup %1807 }
 0x1dd   : > { %v1453_v15 = vrot.slane %v1446_v16, %v3147_v38  ;;  %1827 = vpow2.f32 %v1066_v31  ;;  %v1074_v50 = vmul.f32 1.442695, %v976_v34  ;;  %v1142_v18 = vadd.f32 %v1804_v1, %v1141_v60  ;;  %v1810_v13 = vpop.eup %1809 }
 0x1de   : > { %v1179_v37 = vadd.f32 %v1806_v33, %v1178_v29  ;;  %v983_v43 = vsub.f32 %v2613_v14, %v3203_v42  ;;  %1829 = vpow2.f32 %v1068_v4  ;;  %v1076_v21 = vmul.f32 1.442695, %v977_v61  ;;  %v1812_v52 = vpop.eup %1811 }
 0x1df   : > { %v1460_v39 = vrot.slane %v1453_v15, %v3147_v38  ;;  %1831 = vpow2.f32 %v1070_v2  ;;  %v1078_v34 = vmul.f32 1.442695, %v3700_v10  ;;  %v1143_v54 = vadd.f32 %v1808_v49, %v1142_v18  ;;  %v1814_v47 = vpop.eup %1813 }
 0x1e0   : > { %v1180_v11 = vadd.f32 %v1810_v13, %v1179_v37  ;;  %v984_v36 = vsub.f32 %v2656_v12, %v3198_v6  ;;  %1833 = vpow2.f32 %v1072_v41  ;;  %v1080_v14 = vmul.f32 1.442695, %v979_v32  ;;  %v1816_v20 = vpop.eup %1815 }
 0x1e1   : > { %v1462_v55 = vadd.f32 %v1460_v39, %v1233_v5  ;;  %1835 = vpow2.f32 %v1074_v50  ;;  %v1082_v57 = vmul.f32 1.442695, %v980_v7  ;;  %v1144_v61 = vadd.f32 %v1812_v52, %v1143_v54  ;;  %v1818_v28 = vpop.eup %1817 }
 0x1e2   : > { %v1181_v45 = vadd.f32 %v1814_v47, %v1180_v11  ;;  %v985_v58 = vsub.f32 %v2666_v63, %v3203_v42  ;;  %1837 = vpow2.f32 %v1076_v21  ;;  %v1084_v9 = vmul.f32 1.442695, %v981_v62  ;;  %v1820_v12 = vpop.eup %1819 }
 0x1e3   : > { %1463 = vst.msk [vmem:[#allocation9] sm:$0x3] %vm3175_vm11, %v1462_v55  ;;  %1839 = vpow2.f32 %v1078_v34  ;;  %v1086_v32 = vmul.f32 1.442695, %v982_v27  ;;  %v1145_v8 = vadd.f32 %v1816_v20, %v1144_v61  ;;  %v987_v17 = vsub.f32 %v2693_v44, %v3203_v42 }
 0x1e4   : > { %v1182_v46 = vadd.f32 %v1818_v28, %v1181_v45  ;;  %v1822_v7 = vpop.eup %1821  ;;  %v988_v63 = vsub.f32 %v2734_v30, %v3198_v6  ;;  %1841 = vpow2.f32 %v1080_v14  ;;  %v1088_v22 = vmul.f32 1.442695, %v983_v43 }
 0x1e5   : > { %v1824_v19 = vpop.eup %1823  ;;  %1843 = vpow2.f32 %v1082_v57  ;;  %v1090_v31 = vmul.f32 1.442695, %v984_v36  ;;  %v1146_v53 = vadd.f32 %v1820_v12, %v1145_v8  ;;  %v989_v62 = vsub.f32 %v2748_v0, %v3203_v42  ;;  %v3702_v57 = vld [vmem:[#allocation46_spill] sm:$0xff] }
 0x1e6   : > { %v1183_v23 = vadd.f32 %v1822_v7, %v1182_v46  ;;  %v1826_v59 = vpop.eup %1825  ;;  %v990_v25 = vsub.f32 %v2758_v24, %v3198_v6  ;;  %1845 = vpow2.f32 %v1084_v9  ;;  %v1092_v4 = vmul.f32 1.442695, %v985_v58  ;;  %v3704_v9 = vld [vmem:[#allocation47_spill] sm:$0xff] }
 0x1e7   : > { %v1828_v44 = vpop.eup %1827  ;;  %1847 = vpow2.f32 %v1086_v32  ;;  %v1094_v16 = vmul.f32 1.442695, %v986_v40  ;;  %v1147_v30 = vadd.f32 %v1824_v19, %v1146_v53  ;;  %v991_v60 = vsub.f32 %v2825_v48, %v3203_v42  ;;  %v3706_v46 = vld [vmem:[#allocation19_spill] sm:$0xff] }
 0x1e8   : > { %v1184_v1 = vadd.f32 %v1826_v59, %v1183_v23  ;;  %v1830_v2 = vpop.eup %1829  ;;  %v992_v29 = vsub.f32 %v2842_v3, %v3198_v6  ;;  %1849 = vpow2.f32 %v1088_v22  ;;  %v1096_v33 = vmul.f32 1.442695, %v987_v17  ;;  %v3708_v19 = vld [vmem:[#allocation23_spill] sm:$0xff]  ;;  %v3710_v59 = vld [vmem:[#allocation53_spill] sm:$0xff] }
 0x1e9   : > { %v1832_v0 = vpop.eup %1831  ;;  %1851 = vpow2.f32 %v1090_v31  ;;  %v1098_v27 = vmul.f32 1.442695, %v988_v63  ;;  %v1148_v24 = vadd.f32 %v1828_v44, %v1147_v30  ;;  %v993_v49 = vsub.f32 %v2866_v35, %v3203_v42  ;;  %v3712_v30 = vld [vmem:[#allocation54_spill] sm:$0xff] }
 0x1ea   : > { %v1185_v41 = vadd.f32 %v1830_v2, %v1184_v1  ;;  %v1834_v15 = vpop.eup %1833  ;;  %v994_v50 = vsub.f32 %v2882_v51, %v3198_v6  ;;  %1853 = vpow2.f32 %v1092_v4  ;;  %v1100_v18 = vmul.f32 1.442695, %v989_v62 }
 0x1eb   : > { %v1836_v48 = vpop.eup %1835  ;;  %1855 = vpow2.f32 %v1094_v16  ;;  %v1102_v37 = vmul.f32 1.442695, %v990_v25  ;;  %v1149_v3 = vadd.f32 %v1832_v0, %v1148_v24  ;;  %v1104_v43 = vmul.f32 1.442695, %v991_v60 }
 0x1ec   : > { %v1186_v5 = vadd.f32 %v1834_v15, %v1185_v41  ;;  %v1838_v13 = vpop.eup %1837  ;;  %1857 = vpow2.f32 %v1096_v33  ;;  %v1106_v39 = vmul.f32 1.442695, %v992_v29  ;;  %v1108_v35 = vmul.f32 1.442695, %v993_v49  ;;  %v3714_v29 = vld [vmem:[#allocation55_spill] sm:$0xff]  ;;  %v3716_v15 = vld [vmem:[#allocation56_spill] sm:$0xff] }
 0x1ed   : > { %v1840_v21 = vpop.eup %1839  ;;  %1859 = vpow2.f32 %v1098_v27  ;;  %v1150_v52 = vadd.f32 %v1836_v48, %v1149_v3  ;;  %v1110_v51 = vmul.f32 1.442695, %v994_v50  ;;  %v3701_v14 = vsub.f32 %v3666_v56, %v3203_v42  ;;  %v3718_v48 = vld [vmem:[#allocation24_spill] sm:$0xff] }
 0x1ee   : > { %v1187_v10 = vadd.f32 %v1838_v13, %v1186_v5  ;;  %v1842_v34 = vpop.eup %1841  ;;  %1861 = vpow2.f32 %v1100_v18  ;;  %v3703_v61 = vsub.f32 %v3702_v57, %v3198_v6  ;;  %v3705_v12 = vsub.f32 %v3704_v9, %v3203_v42 }
 0x1ef   : > { %v1844_v54 = vpop.eup %1843  ;;  %1863 = vpow2.f32 %v1102_v37  ;;  %v1151_v11 = vadd.f32 %v1840_v21, %v1150_v52  ;;  %v1112_v55 = vmul.f32 1.442695, %v3701_v14  ;;  %v3707_v56 = vsub.f32 %v3706_v46, %v3198_v6  ;;  %v3720_v21 = vld [vmem:[#allocation28_spill] sm:$0xff] }
 0x1f0   : > { %v1188_v47 = vadd.f32 %v1842_v34, %v1187_v10  ;;  %v1846_v36 = vpop.eup %1845  ;;  %1865 = vpow2.f32 %v1104_v43  ;;  %v1114_v45 = vmul.f32 1.442695, %v3703_v61  ;;  %v1116_v32 = vmul.f32 1.442695, %v3705_v12 }
 0x1f1   : > { %v1848_v20 = vpop.eup %1847  ;;  %1867 = vpow2.f32 %v1106_v39  ;;  %v1152_v28 = vadd.f32 %v1844_v54, %v1151_v11  ;;  %v1118_v7 = vmul.f32 1.442695, %v3707_v56  ;;  %v3709_v31 = vsub.f32 %v3708_v19, %v3203_v42 }
 0x1f2   : > { %v1189_v58 = vadd.f32 %v1846_v36, %v1188_v47  ;;  %v1850_v40 = vpop.eup %1849  ;;  %1869 = vpow2.f32 %v1108_v35  ;;  %v3711_v62 = vsub.f32 %v3710_v59, %v3198_v6  ;;  %v3713_v1 = vsub.f32 %v3712_v30, %v3203_v42 }
 0x1f3   : > { %v1852_v8 = vpop.eup %1851  ;;  %1871 = vpow2.f32 %v1110_v51  ;;  %v1153_v17 = vadd.f32 %v1848_v20, %v1152_v28  ;;  %v1120_v53 = vmul.f32 1.442695, %v3709_v31  ;;  %v3715_v33 = vsub.f32 %v3714_v29, %v3198_v6  ;;  %v3722_v31 = vld [vmem:[#allocation30_spill] sm:$0xff] }
 0x1f4   : > { %v1190_v63 = vadd.f32 %v1850_v40, %v1189_v58  ;;  %v1854_v22 = vpop.eup %1853  ;;  %1873 = vpow2.f32 %v1112_v55  ;;  %v1122_v25 = vmul.f32 1.442695, %v3711_v62  ;;  %v1124_v2 = vmul.f32 1.442695, %v3713_v1 }
 0x1f5   : > { %v1856_v23 = vpop.eup %1855  ;;  %1875 = vpow2.f32 %v1114_v45  ;;  %v1154_v4 = vadd.f32 %v1852_v8, %v1153_v17  ;;  %v1126_v0 = vmul.f32 1.442695, %v3715_v33  ;;  %v3717_v49 = vsub.f32 %v3716_v15, %v3203_v42 }
 0x1f6   : > { %v1191_v44 = vadd.f32 %v1854_v22, %v1190_v63  ;;  %v1858_v16 = vpop.eup %1857  ;;  %1877 = vpow2.f32 %v1116_v32  ;;  %v3719_v37 = vsub.f32 %v3718_v48, %v3198_v6  ;;  %v3721_v39 = vsub.f32 %v3720_v21, %v3203_v42 }
 0x1f7   : > { %v1860_v60 = vpop.eup %1859  ;;  %1879 = vpow2.f32 %v1118_v7  ;;  %v1155_v27 = vadd.f32 %v1856_v23, %v1154_v4  ;;  %v1128_v50 = vmul.f32 1.442695, %v3717_v49 }
 0x1f8   : > { %v1192_v24 = vadd.f32 %v1858_v16, %v1191_v44  ;;  %v1862_v41 = vpop.eup %1861  ;;  %1881 = vpow2.f32 %v1120_v53  ;;  %v1130_v3 = vmul.f32 1.442695, %v3719_v37  ;;  %v1132_v52 = vmul.f32 1.442695, %v3721_v39  ;;  %v3723_v53 = vld [vmem:[#allocation32_spill] sm:$0xff] }
 0x1f9   : > { %v1864_v18 = vpop.eup %1863  ;;  %1883 = vpow2.f32 %v1122_v25  ;;  %v1156_v5 = vadd.f32 %v1860_v60, %v1155_v27  ;;  %v3724_v23 = vsub.f32 %v3722_v31, %v3723_v53  ;;  %v2053_v39 = vmov (!%p1622_p4), 0.0  }
 0x1fa   : > { %v1193_v13 = vadd.f32 %v1862_v41, %v1192_v24  ;;  %v1866_v43 = vpop.eup %1865  ;;  %1885 = vpow2.f32 %v1124_v2  ;;  %v926_v41 = vld [vmem:[#allocation3] sm:$0x3] }
 0x1fb   : > { %v1868_v10 = vpop.eup %1867  ;;  %1887 = vpow2.f32 %v1126_v0  ;;  %v1157_v34 = vadd.f32 %v1864_v18, %v1156_v5  ;;  %v928_v59 = vmul.f32 1.442695, %v3724_v23 }
 0x1fc   : > { %v1194_v35 = vadd.f32 %v1866_v43, %v1193_v13  ;;  %v1870_v54 = vpop.eup %1869  ;;  %1889 = vpow2.f32 %v1128_v50  ;;  %v3725_v13 = vld [vmem:[#allocation13_spill] sm:$0xff] (!%p1622_p4)  ;;  %v1476_v43 = vld [vmem:[#allocation9] sm:$0x3] (!%p1622_p4) }
 0x1fd   : > { %v1872_v51 = vpop.eup %1871  ;;  %1891 = vpow2.f32 %v1130_v3  ;;  %v1158_v11 = vadd.f32 %v1868_v10, %v1157_v34  ;;  %v1468_v3 = vld [vmem:[#allocation2] sm:$0x3] (!%p1622_p4)  ;;  %vm1473_vm12 = vcmp.ge.s32.totalorder (!%p1622_p4), %v3725_v13, 0 }
 0x1fe   : > { %v1195_v47 = vadd.f32 %v1870_v54, %v1194_v35  ;;  %v1874_v6 = vpop.eup %1873  ;;  %1893 = vpow2.f32 %v1132_v52  ;;  %v1623_v52 = vsel (!%p1622_p4), %vm1473_vm12, 1.0, %v2053_v39 }
 0x1ff   : > { %v1876_v36 = vpop.eup %1875  ;;  %v1159_v14 = vadd.f32 %v1872_v51, %v1158_v11  ;;  %1895 = vpow2.f32 %v928_v59 }
 0x200   : > { %v1196_v55 = vadd.f32 %v1874_v6, %v1195_v47  ;;  %v1878_v20 = vpop.eup %1877 }
 0x201   : > { %v1880_v57 = vpop.eup %1879  ;;  %v1160_v61 = vadd.f32 %v1876_v36, %v1159_v14 }
 0x202   : > { %v1197_v42 = vadd.f32 %v1878_v20, %v1196_v55  ;;  %v1882_v45 = vpop.eup %1881 }
 0x203   : > { %v1884_v28 = vpop.eup %1883  ;;  %v1161_v58 = vadd.f32 %v1880_v57, %v1160_v61 }
 0x204   : > { %v1198_v40 = vadd.f32 %v1882_v45, %v1197_v42  ;;  %v1886_v9 = vpop.eup %1885 }
 0x205   : > { %v1888_v12 = vpop.eup %1887  ;;  %v1162_v32 = vadd.f32 %v1884_v28, %v1161_v58 }
 0x206   : > { %v1199_v8 = vadd.f32 %v1886_v9, %v1198_v40  ;;  %v1890_v46 = vpop.eup %1889 }
 0x207   : > { %v1892_v56 = vpop.eup %1891  ;;  %v1163_v7 = vadd.f32 %v1888_v12, %v1162_v32 }
 0x208   : > { %v1200_v17 = vadd.f32 %v1890_v46, %v1199_v8  ;;  %v1894_v63 = vpop.eup %1893 }
 0x209   : > { %v1164_v22 = vadd.f32 %v1892_v56, %v1163_v7  ;;  %v1896_v24 = vpop.eup %1895 }
 0x20a   : > { %v1201_v19 = vadd.f32 %v1894_v63, %v1200_v17  ;;  %v930_v49 = vmul.f32 %v1896_v24, %v926_v41 }
 0x20b   : > { %v1165_v62 = vrot.slane %v1164_v22, 4 }
 0x20c   : > { %v1202_v25 = vrot.slane %v1201_v19, 4 }
 0x20d   : > { %v1166_v4 = vadd.f32 %v1165_v62, %v1164_v22 }
 0x20e   : > { %v1203_v44 = vadd.f32 %v1202_v25, %v1201_v19 }
 0x20f   : > { %v1167_v16 = vrot.slane %v1166_v4, 2 }
 0x210   : > { %v1204_v30 = vrot.slane %v1203_v44, 2 }
 0x211   : > { %v1168_v1 = vadd.f32 %v1167_v16, %v1166_v4 }
 0x212   : > { %v1205_v2 = vadd.f32 %v1204_v30, %v1203_v44 }
 0x213   : > { %v1169_v60 = vrot.slane %v1168_v1, 1 }
 0x214   : > { %v1206_v29 = vrot.slane %v1205_v2, 1 }
 0x215   : > { %v1170_v33 = vadd.f32 %v1169_v60, %v1168_v1 }
 0x216   : > { %v1207_v0 = vadd.f32 %v1206_v29, %v1205_v2 }
 0x218   : > { %v1210_v27 = vcombine.low %v1170_v33, %v1207_v0 }
 0x21a   : > { %v1217_v15 = vrot.slane %v1210_v27, %v3147_v38  ;;  %1467 = sbr.rel (%p1622_p4) target bundleno = 572 (0x23c), region = 48 }
 0x21c   : > { %v1224_v50 = vrot.slane %v1217_v15, %v3147_v38 }
 0x21e   : > { %v1226_v18 = vadd.f32 %v1224_v50, %v930_v49 }
 0x220   : > { %1231 = vst.msk [vmem:[#allocation3] sm:$0x3] %vm3175_vm11, %v1226_v18 }
 0x227   : > { %v1469_v48 = vld [vmem:[#allocation3] sm:$0x3] }
 0x228   : > { %1897 = vlog2.f32 %v1469_v48 }
 0x232   : > { %v1898_v37 = vpop.eup %1897 }
 0x233   : > { %v1471_v5 = vmul.f32 0.6931472, %v1898_v37 }
 0x235   : > { %v1472_v21 = vadd.f32 %v1471_v5, %v1468_v3 }
 0x237   : > { %v1477_v10 = vsub.f32 %v1472_v21, %v1476_v43 }
 0x239   : > { %v1478_v38 = vmul.f32 %v1623_v52, %v1477_v10 }
 0x23b   : > { %1479 = vst.msk [vmem:[#allocation9] sm:$0x3] %vm3175_vm11, %v1478_v38 }
 0x23c PF: > { %p3442_p1 = scmp.eq.s32.totalorder %s1577_s18, 1  ;;  %s2054_s23 = smov [#allocation9]  }
 0x23d   : > { %s1490_s4 = sshll.u32 %s2054_s23, 4  ;;  %s1491_s4 = int_to_ptr.vmem [resolvable:$true] %s1490_s4 }
 0x23e   : > { %s1957_s5 = scalar_lea.vmem %s1491_s4, 32  ;;  %p1964_p10 = scmp.lt.s32.totalorder %s1491_s4, %s1491_s4 }
 0x23f   : > { %p1958_p5 = scmp.ne.s32.totalorder %s1491_s4, %s1957_s5  ;;  %p1965_p11 = scmp.lt.s32.totalorder %s1957_s5, %s1957_s5 }
 0x241   : > { %p1959_p8 = pnand %p1958_p5, %p3442_p1  ;;  %p1966_p13 = por %p1965_p11, %p1964_p10 }
 0x243   : > { %p1960_p9 = pneg %p1959_p8 }
 0x245   : > { %p1967_p2 = pnand %p1966_p13, %p1960_p9 }
 0x247   : > { %1970 = shalt.err (!%p1967_p2)
}
 0x248   : > { %s1971_s18 = scalar_lea.hbm %s3489_s3, 32 }
 0x249   : > { %p1972_p3 = scmp.ne.s32.totalorder %s3489_s3, %s1971_s18  ;;  %p1977_p6 = scmp.lt.u32.totalorder %s1971_s18, %s3489_s3 }
 0x24b   : > { %p1973_p12 = pnand %p1972_p3, %p3442_p1 }
 0x24d   : > { %p1974_p0 = pneg %p1973_p12 }
 0x24f   : > { %p1979_p7 = pnand %p1977_p6, %p1974_p0 }
 0x251   : > { %1982 = shalt.err (!%p1979_p7)
}
 0x252   : > { %1652 = dma.vmem_to_hbm [thread:$0]  (%p3442_p1), %s1491_s4, 32, %s3489_s3, [#allocation6]  }
 0x253   : > { %2016 = dma.done.wait (%p3442_p1), [#allocation6], 32  }
 0x254   : > { %2018 = vsyncadd (%p3442_p1), [#allocation6], 4294967264 }
 0x255 PF: > { %s18_s17 = sadd.s32 1, %s2041_s17   ;;  %s3727_s12 = smov %s2025_s13 }
 0x256   : > { %p15_p4 = scmp.ge.s32.totalorder %s18_s17, 4   ;;  %s3728_s13 = smov %s2029_s14 }
 0x257   : > { %s3729_s14 = smov %s2160_s28  ;;  %s3730_s15 = smov %s2037_s16 }
 0x258   : > { %s3731_s16 = smov %s3733_s25  ;;  %17 = sbr.rel (!%p15_p4) target bundleno = 6 (0x6), region = 87 }
 0x25f   :  { %1503 = vsyncpa [#allocation5], 1 }
 0x260   :  { %1505 = vsyncpa [#allocation5 + $0x1], 1 }
 0x261   :  { %1506 = vsyncpa [#allocation8], 1 }
 0x262   :  { %1508 = vsyncpa [#allocation8 + $0x1], 1 }
 0x263   :  { %1509 = vsyncpa [#allocation6], 1 }
 0x264   :  { %1511 = vsyncpa [#allocation6 + $0x1], 1 }

</bundles_post_ra>
